<compile_context>
chip_gen: v7x
topology: tpu7x:2x2x1
jax: 0.10.0
libtpu: 0.0.40
codegen_flags: <defaults>
</compile_context>

<pallas_src>
import functools

import jax
import jax.numpy as jnp
from jax.experimental import pallas as pl
from jax.experimental.pallas import tpu as pltpu


# ----------------------------- Pallas kernel ------------------------------- #

def _sage_fused_kernel(adj_hbm, x_ref, wlr_ref, b_ref, gamma_ref, beta_ref,
                       out_ref, adj_vmem, *, num_layers, eps, n_real, apply_bn):
    # Single manual HBM->VMEM copy of the int8 adjacency (no double buffering
    # at grid=(1,)); 0/1 values are exact through every cast below.
    pltpu.sync_copy(adj_hbm, adj_vmem)
    adj_f32 = adj_vmem[...].astype(jnp.float32)          # (Np, Np)
    adj_bf = adj_f32.astype(jnp.bfloat16)

    # In-kernel degree for mean aggregation (padded columns are zero, so real
    # rows get their true degree; zero-degree rows clamp to 1, harmless).
    deg = jnp.sum(adj_f32, axis=1, keepdims=True)        # (Np, 1) f32
    inv_deg = 1.0 / jnp.maximum(deg, 1.0)

    n_pad = x_ref.shape[0]
    if n_real < n_pad:
        row_ids = jax.lax.broadcasted_iota(jnp.int32, (n_pad, 1), 0)
        row_mask = (row_ids < n_real).astype(jnp.float32)
    else:
        row_mask = None
    inv_n = 1.0 / float(n_real)

    h = x_ref[...].astype(jnp.float32)                   # (Np, P), stays on-chip

    for li in range(num_layers):                          # unrolled (static count)
        h_bf = h.astype(jnp.bfloat16)

        # mean aggregation: inv_deg * (A @ h), f32 accumulation on the MXU
        agg = jnp.dot(adj_bf, h_bf, preferred_element_type=jnp.float32) * inv_deg

        # SAGEConv, single fused MXU pass: [agg | h] @ [Wl ; Wr]  (K = 2P)
        cat = jnp.concatenate([agg.astype(jnp.bfloat16), h_bf], axis=-1)
        y = jnp.dot(cat, wlr_ref[li], preferred_element_type=jnp.float32)
        y = y + b_ref[li]                                 # (1, P) broadcast

        if li < num_layers - 1:
            if apply_bn[li]:
                # BatchNorm1d over the real node rows only (padded rows masked
                # out of the statistics), folded into one FMA sweep.
                ym = y * row_mask if row_mask is not None else y
                mean = jnp.sum(ym, axis=0, keepdims=True) * inv_n
                yc = y - mean
                if row_mask is not None:
                    yc = yc * row_mask
                var = jnp.sum(yc * yc, axis=0, keepdims=True) * inv_n  # biased
                scale = gamma_ref[li] * jax.lax.rsqrt(var + eps)
                shift = beta_ref[li] - mean * scale
                y = y * scale + shift
            y = jnp.maximum(y, 0.0)                       # ReLU
            # TODO(synk): dropout is identity (eval semantics)
        h = y

    out_ref[...] = h                                      # lane-dense (Np, P) f32


# --------------------------- One-time preprocessing ------------------------- #

def _round_up(v, m):
    return ((v + m - 1) // m) * m


def _pad2(a, rows, cols):
    return jnp.pad(a, ((0, rows - a.shape[0]), (0, cols - a.shape[1])))


def pack_sage_params(convs, bns, in_channels):
    """Pad/stack/cast all per-layer parameters ONCE (hoisted out of forward)."""
    num_layers = len(convs)
    dims = [in_channels] + [c["wl"].shape[1] for c in convs]
    P = _round_up(max(dims), 128)         # common lane-dense padded feature width

    # Fused [Wl; Wr] slab per layer: (num_layers, 2P, P) bf16, zero padding.
    wlr = jnp.stack([
        jnp.concatenate([_pad2(c["wl"], P, P), _pad2(c["wr"], P, P)], axis=0)
        for c in convs]).astype(jnp.bfloat16)
    b = jnp.stack([_pad2(c["b"], 1, P) for c in convs]).astype(jnp.float32)
    gamma = jnp.stack([_pad2(g["gamma"], 1, P) for g in bns]).astype(jnp.float32)
    beta = jnp.stack([_pad2(g["beta"], 1, P) for g in bns]).astype(jnp.float32)

    return {"wlr": wlr, "b": b, "gamma": gamma, "beta": beta,
            "P": P, "out_c": dims[-1], "num_layers": num_layers}


def prepare_adjacency(adj, n_pad):
    """Binary adjacency -> zero-padded (n_pad, n_pad) int8, done once."""
    n = adj.shape[0]
    adj_i8 = (adj != 0).astype(jnp.int8)
    return jnp.pad(adj_i8, ((0, n_pad - n), (0, n_pad - n)))


# ------------------------------- Forward ----------------------------------- #

def sage_forward(x, adj_padded, packed, *, eps=1e-5, use_batch_only_training=True):
    """Fused SAGE forward. x: (N, in_c) f32, adj_padded: (Np, Np) int8 binary.

    Returns (N, out_c) f32. Hidden layers: conv -> bn -> relu -> [dropout];
    final conv bare. For num_layers == 2 with use_batch_only_training=True the
    BN is skipped (matching the PyTorch branch)."""
    n, in_c = x.shape
    n_pad = adj_padded.shape[0]
    P = packed["P"]
    num_layers = packed["num_layers"]
    assert num_layers >= 2
    assert adj_padded.dtype == jnp.int8 and adj_padded.shape == (n_pad, n_pad)
    assert n_pad % 128 == 0 and n <= n_pad

    apply_bn = tuple(not (num_layers == 2 and use_batch_only_training)
                     for _ in range(num_layers - 1))

    # Only per-call preprocessing left: pad x to (Np, P) bf16 (tiny).
    x_p = jnp.pad(x, ((0, n_pad - n), (0, P - in_c))).astype(jnp.bfloat16)

    # Generation-aware VMEM budget (v5e/v6e 128 MiB, v7x 64 MiB physical).
    try:
        vmem_cap = int(pltpu.get_tpu_info().vmem_capacity_bytes)
    except Exception:
        vmem_cap = 64 * 1024 * 1024
    vmem_budget = int(min(vmem_cap, 128 * 1024 * 1024) * 0.75)

    L = num_layers
    approx_vmem = (
        n_pad * n_pad * (1 + 4 + 2)                       # int8 adj + f32/bf16 casts
        + 2 * n_pad * P * 2                               # x (bf16, double-buffered)
        + 2 * (L * 2 * P * P * 2 + 3 * L * P * 4)         # weight / bias / bn stacks
        + 2 * n_pad * P * 4                               # output (f32)
        + 5 * n_pad * P * 4 + n_pad * 2 * P * 2           # h/agg/y temps + concat
    )
    assert approx_vmem < vmem_budget, (
        "graph too large for the fused single-block kernel on this TPU "
        "generation; use a tiled per-layer path")

    out_p = pl.pallas_call(
        functools.partial(_sage_fused_kernel, num_layers=num_layers, eps=eps,
                          n_real=n, apply_bn=apply_bn),
        out_shape=jax.ShapeDtypeStruct((n_pad, P), jnp.float32),
        grid=(1,),
        in_specs=[
            pl.BlockSpec(memory_space=pl.ANY),                        # adj (HBM)
            pl.BlockSpec((n_pad, P), lambda i: (0, 0)),               # x (padded)
            pl.BlockSpec((L, 2 * P, P), lambda i: (0, 0, 0)),         # [Wl;Wr] stack
            pl.BlockSpec((L, 1, P), lambda i: (0, 0, 0)),             # bias stack
            pl.BlockSpec((L - 1, 1, P), lambda i: (0, 0, 0)),         # gamma stack
            pl.BlockSpec((L - 1, 1, P), lambda i: (0, 0, 0)),         # beta stack
        ],
        out_specs=pl.BlockSpec((n_pad, P), lambda i: (0, 0)),
        scratch_shapes=[pltpu.VMEM((n_pad, n_pad), jnp.int8)],        # adj staging
        compiler_params=pltpu.CompilerParams(
            dimension_semantics=("arbitrary",),
            vmem_limit_bytes=vmem_budget),
    )(adj_padded, x_p, packed["wlr"], packed["b"], packed["gamma"], packed["beta"])

    return out_p[:n, :packed["out_c"]]    # drop zero-padded rows / output lanes


# ------------------------------ SAGE params --------------------------------- #

def init_sage_params(key, in_channels, hidden_channels, out_channels, num_layers):
    dims = [in_channels] + [hidden_channels] * (num_layers - 1) + [out_channels]
    convs, bns = [], []
    for li in range(num_layers):
        fin, fout = dims[li], dims[li + 1]
        key, k1, k2, k3 = jax.random.split(key, 4)
        convs.append({
            "wl": 0.1 * jax.random.normal(k1, (fin, fout), jnp.float32),
            "wr": 0.1 * jax.random.normal(k2, (fin, fout), jnp.float32),
            "b": 0.1 * jax.random.normal(k3, (1, fout), jnp.float32),
        })
        if li < num_layers - 1:
            key, k4, k5 = jax.random.split(key, 3)
            bns.append({
                "gamma": 1.0 + 0.1 * jax.random.normal(k4, (1, fout), jnp.float32),
                "beta": 0.1 * jax.random.normal(k5, (1, fout), jnp.float32),
            })
    return convs, bns


# --------------------------------- Main ------------------------------------ #

if __name__ == "__main__":
    N = 64               # number of graph nodes (padded to 128 inside)
    IN_C, HID_C, OUT_C = 16, 32, 8
    NUM_LAYERS = 3

    key = jax.random.PRNGKey(0)
    key, kx, ka, kp = jax.random.split(key, 4)

    x = jax.random.normal(kx, (N, IN_C), jnp.float32)
    # random sparse-ish binary adjacency (no self-loops required by SAGEConv)
    adj = (jax.random.uniform(ka, (N, N)) < 0.1).astype(jnp.float32)

    convs, bns = init_sage_params(kp, IN_C, HID_C, OUT_C, NUM_LAYERS)

    # One-time preprocessing hoisted out of the forward path.
    packed = pack_sage_params(convs, bns, IN_C)
    n_pad = _round_up(N, 128)
    adj_p = prepare_adjacency(adj, n_pad)

    fwd = jax.jit(functools.partial(sage_forward, packed=packed))
    out = jax.block_until_ready(fwd(x, adj_p))

    assert out.shape == (N, OUT_C), out.shape
    assert out.dtype == jnp.float32
    assert bool(jnp.all(jnp.isfinite(out)))
    print("KERNEL_OK")
</pallas_src>

<mosaic_0001>
module attributes {stable_mosaic.version = 11 : i64} {
  func.func @_sage_fused_kernel(%arg0: i32, %arg1: memref<128x128xi8, #tpu.memory_space<any>>, %arg2: memref<128x128xbf16, #tpu.memory_space<vmem>>, %arg3: memref<3x256x128xbf16, #tpu.memory_space<vmem>>, %arg4: memref<3x1x128xf32, #tpu.memory_space<vmem>>, %arg5: memref<2x1x128xf32, #tpu.memory_space<vmem>>, %arg6: memref<2x1x128xf32, #tpu.memory_space<vmem>>, %arg7: memref<128x128xf32, #tpu.memory_space<vmem>>, %arg8: memref<128x128xi8, #tpu.memory_space<vmem>>) attributes {dimension_semantics = [#tpu.dimension_semantics<arbitrary>], iteration_bounds = array<i64: 1>, scalar_prefetch = 0 : i64, scratch_operands = 1 : i64, tpu.core_type = #tpu.core_type<tc>, window_params = [{}, {pipeline_mode = #tpu.pipeline_mode<synchronous>, transform_indices = @transform_1, window_bounds = array<i64: 128, 128>}, {pipeline_mode = #tpu.pipeline_mode<synchronous>, transform_indices = @transform_2, window_bounds = array<i64: 3, 256, 128>}, {pipeline_mode = #tpu.pipeline_mode<synchronous>, transform_indices = @transform_3, window_bounds = array<i64: 3, 1, 128>}, {pipeline_mode = #tpu.pipeline_mode<synchronous>, transform_indices = @transform_4, window_bounds = array<i64: 2, 1, 128>}, {pipeline_mode = #tpu.pipeline_mode<synchronous>, transform_indices = @transform_5, window_bounds = array<i64: 2, 1, 128>}, {pipeline_mode = #tpu.pipeline_mode<synchronous>, transform_indices = @transform_6, window_bounds = array<i64: 128, 128>}]} {
    "tpu.region"() ({
      %118 = tpu.sem_alloc : memref<!tpu.dma_semaphore, #tpu.memory_space<semaphore_mem>>
      tpu.enqueue_dma source(%arg1 : memref<128x128xi8, #tpu.memory_space<any>>) target(%arg8 : memref<128x128xi8, #tpu.memory_space<vmem>>) target_semaphore(%118 : memref<!tpu.dma_semaphore, #tpu.memory_space<semaphore_mem>>)
      tpu.wait_dma2 semaphore(%118 : memref<!tpu.dma_semaphore, #tpu.memory_space<semaphore_mem>>) src(%arg1 : memref<128x128xi8, #tpu.memory_space<any>>) dst(%arg8 : memref<128x128xi8, #tpu.memory_space<vmem>>)
      tpu.yield
    }) : () -> ()
    %c0 = arith.constant 0 : index
    %c0_0 = arith.constant 0 : index
    %0 = vector.load %arg8[%c0, %c0_0] : memref<128x128xi8, #tpu.memory_space<vmem>>, vector<128x128xi8>
    %1 = arith.sitofp %0 : vector<128x128xi8> to vector<128x128xf32>
    %2 = arith.truncf %1 : vector<128x128xf32> to vector<128x128xbf16>
    %cst = arith.constant dense<0.000000e+00> : vector<128xf32>
    %3 = vector.multi_reduction <add>, %1, %cst [1] : vector<128x128xf32> to vector<128xf32>
    %4 = vector.shape_cast %3 : vector<128xf32> to vector<128x1xf32>
    %cst_1 = arith.constant 1.000000e+00 : f32
    %5 = vector.broadcast %cst_1 : f32 to vector<128x1xf32>
    %6 = arith.maximumf %4, %5 : vector<128x1xf32>
    %cst_2 = arith.constant 1.000000e+00 : f32
    %7 = vector.broadcast %cst_2 : f32 to vector<128x1xf32>
    %8 = arith.divf %7, %6 : vector<128x1xf32>
    %9 = tpu.iota {dimensions = array<i32: 0>} : vector<128x1xi32>
    %c64_i32 = arith.constant 64 : i32
    %10 = vector.broadcast %c64_i32 : i32 to vector<128x1xi32>
    %11 = arith.cmpi slt, %9, %10 : vector<128x1xi32>
    %12 = arith.extui %11 : vector<128x1xi1> to vector<128x1xi32>
    %13 = arith.sitofp %12 : vector<128x1xi32> to vector<128x1xf32>
    %c0_3 = arith.constant 0 : index
    %c0_4 = arith.constant 0 : index
    %14 = vector.load %arg2[%c0_3, %c0_4] : memref<128x128xbf16, #tpu.memory_space<vmem>>, vector<128x128xbf16>
    %15 = arith.extf %14 : vector<128x128xbf16> to vector<128x128xf32>
    %16 = arith.truncf %15 : vector<128x128xf32> to vector<128x128xbf16>
    %cst_5 = arith.constant dense<0.000000e+00> : vector<128x128xf32>
    %17 = tpu.matmul %2, %16, %cst_5 {dimension_numbers = #tpu.dot_dimension_numbers<[1], [0], [0], [1], [0, 0, 1, 1], [], []>} : vector<128x128xbf16>, vector<128x128xbf16>, vector<128x128xf32> -> vector<128x128xf32>
    %18 = vector.broadcast %8 : vector<128x1xf32> to vector<128x128xf32>
    %19 = arith.mulf %17, %18 : vector<128x128xf32>
    %20 = arith.truncf %19 : vector<128x128xf32> to vector<128x128xbf16>
    %21 = tpu.concatenate %20, %16 in 1 : vector<128x128xbf16>, vector<128x128xbf16> -> vector<128x256xbf16>
    %c0_6 = arith.constant 0 : index
    %c0_7 = arith.constant 0 : index
    %c0_8 = arith.constant 0 : index
    %22 = vector.load %arg3[%c0_6, %c0_7, %c0_8] : memref<3x256x128xbf16, #tpu.memory_space<vmem>>, vector<1x256x128xbf16>
    %23 = vector.shape_cast %22 : vector<1x256x128xbf16> to vector<256x128xbf16>
    %cst_9 = arith.constant dense<0.000000e+00> : vector<128x128xf32>
    %24 = tpu.matmul %21, %23, %cst_9 {dimension_numbers = #tpu.dot_dimension_numbers<[1], [0], [0], [1], [0, 0, 1, 1], [], []>} : vector<128x256xbf16>, vector<256x128xbf16>, vector<128x128xf32> -> vector<128x128xf32>
    %c0_10 = arith.constant 0 : index
    %c0_11 = arith.constant 0 : index
    %c0_12 = arith.constant 0 : index
    %25 = vector.load %arg4[%c0_10, %c0_11, %c0_12] : memref<3x1x128xf32, #tpu.memory_space<vmem>>, vector<1x1x128xf32>
    %26 = vector.shape_cast %25 : vector<1x1x128xf32> to vector<1x128xf32>
    %27 = vector.broadcast %26 : vector<1x128xf32> to vector<128x128xf32>
    %28 = arith.addf %24, %27 : vector<128x128xf32>
    %29 = vector.broadcast %13 : vector<128x1xf32> to vector<128x128xf32>
    %30 = arith.mulf %28, %29 : vector<128x128xf32>
    %cst_13 = arith.constant dense<0.000000e+00> : vector<128xf32>
    %31 = vector.multi_reduction <add>, %30, %cst_13 [0] : vector<128x128xf32> to vector<128xf32>
    %32 = vector.shape_cast %31 : vector<128xf32> to vector<1x128xf32>
    %cst_14 = arith.constant 1.562500e-02 : f32
    %33 = vector.broadcast %cst_14 : f32 to vector<1x128xf32>
    %34 = arith.mulf %32, %33 : vector<1x128xf32>
    %35 = vector.broadcast %34 : vector<1x128xf32> to vector<128x128xf32>
    %36 = arith.subf %28, %35 : vector<128x128xf32>
    %37 = vector.broadcast %13 : vector<128x1xf32> to vector<128x128xf32>
    %38 = arith.mulf %36, %37 : vector<128x128xf32>
    %39 = arith.mulf %38, %38 : vector<128x128xf32>
    %cst_15 = arith.constant dense<0.000000e+00> : vector<128xf32>
    %40 = vector.multi_reduction <add>, %39, %cst_15 [0] : vector<128x128xf32> to vector<128xf32>
    %41 = vector.shape_cast %40 : vector<128xf32> to vector<1x128xf32>
    %cst_16 = arith.constant 1.562500e-02 : f32
    %42 = vector.broadcast %cst_16 : f32 to vector<1x128xf32>
    %43 = arith.mulf %41, %42 : vector<1x128xf32>
    %c0_17 = arith.constant 0 : index
    %c0_18 = arith.constant 0 : index
    %c0_19 = arith.constant 0 : index
    %44 = vector.load %arg5[%c0_17, %c0_18, %c0_19] : memref<2x1x128xf32, #tpu.memory_space<vmem>>, vector<1x1x128xf32>
    %45 = vector.shape_cast %44 : vector<1x1x128xf32> to vector<1x128xf32>
    %cst_20 = arith.constant 9.99999974E-6 : f32
    %46 = vector.broadcast %cst_20 : f32 to vector<1x128xf32>
    %47 = arith.addf %43, %46 : vector<1x128xf32>
    %48 = math.rsqrt %47 : vector<1x128xf32>
    %49 = arith.mulf %45, %48 : vector<1x128xf32>
    %c0_21 = arith.constant 0 : index
    %c0_22 = arith.constant 0 : index
    %c0_23 = arith.constant 0 : index
    %50 = vector.load %arg6[%c0_21, %c0_22, %c0_23] : memref<2x1x128xf32, #tpu.memory_space<vmem>>, vector<1x1x128xf32>
    %51 = vector.shape_cast %50 : vector<1x1x128xf32> to vector<1x128xf32>
    %52 = arith.mulf %34, %49 : vector<1x128xf32>
    %53 = arith.subf %51, %52 : vector<1x128xf32>
    %54 = vector.broadcast %49 : vector<1x128xf32> to vector<128x128xf32>
    %55 = arith.mulf %28, %54 : vector<128x128xf32>
    %56 = vector.broadcast %53 : vector<1x128xf32> to vector<128x128xf32>
    %57 = arith.addf %55, %56 : vector<128x128xf32>
    %cst_24 = arith.constant 0.000000e+00 : f32
    %58 = vector.broadcast %cst_24 : f32 to vector<128x128xf32>
    %59 = arith.maximumf %57, %58 : vector<128x128xf32>
    %60 = arith.truncf %59 : vector<128x128xf32> to vector<128x128xbf16>
    %cst_25 = arith.constant dense<0.000000e+00> : vector<128x128xf32>
    %61 = tpu.matmul %2, %60, %cst_25 {dimension_numbers = #tpu.dot_dimension_numbers<[1], [0], [0], [1], [0, 0, 1, 1], [], []>} : vector<128x128xbf16>, vector<128x128xbf16>, vector<128x128xf32> -> vector<128x128xf32>
    %62 = vector.broadcast %8 : vector<128x1xf32> to vector<128x128xf32>
    %63 = arith.mulf %61, %62 : vector<128x128xf32>
    %64 = arith.truncf %63 : vector<128x128xf32> to vector<128x128xbf16>
    %65 = tpu.concatenate %64, %60 in 1 : vector<128x128xbf16>, vector<128x128xbf16> -> vector<128x256xbf16>
    %c1 = arith.constant 1 : index
    %c0_26 = arith.constant 0 : index
    %c0_27 = arith.constant 0 : index
    %66 = vector.load %arg3[%c1, %c0_26, %c0_27] : memref<3x256x128xbf16, #tpu.memory_space<vmem>>, vector<1x256x128xbf16>
    %67 = vector.shape_cast %66 : vector<1x256x128xbf16> to vector<256x128xbf16>
    %cst_28 = arith.constant dense<0.000000e+00> : vector<128x128xf32>
    %68 = tpu.matmul %65, %67, %cst_28 {dimension_numbers = #tpu.dot_dimension_numbers<[1], [0], [0], [1], [0, 0, 1, 1], [], []>} : vector<128x256xbf16>, vector<256x128xbf16>, vector<128x128xf32> -> vector<128x128xf32>
    %c1_29 = arith.constant 1 : index
    %c0_30 = arith.constant 0 : index
    %c0_31 = arith.constant 0 : index
    %69 = vector.load %arg4[%c1_29, %c0_30, %c0_31] : memref<3x1x128xf32, #tpu.memory_space<vmem>>, vector<1x1x128xf32>
    %70 = vector.shape_cast %69 : vector<1x1x128xf32> to vector<1x128xf32>
    %71 = vector.broadcast %70 : vector<1x128xf32> to vector<128x128xf32>
    %72 = arith.addf %68, %71 : vector<128x128xf32>
    %73 = vector.broadcast %13 : vector<128x1xf32> to vector<128x128xf32>
    %74 = arith.mulf %72, %73 : vector<128x128xf32>
    %cst_32 = arith.constant dense<0.000000e+00> : vector<128xf32>
    %75 = vector.multi_reduction <add>, %74, %cst_32 [0] : vector<128x128xf32> to vector<128xf32>
    %76 = vector.shape_cast %75 : vector<128xf32> to vector<1x128xf32>
    %cst_33 = arith.constant 1.562500e-02 : f32
    %77 = vector.broadcast %cst_33 : f32 to vector<1x128xf32>
    %78 = arith.mulf %76, %77 : vector<1x128xf32>
    %79 = vector.broadcast %78 : vector<1x128xf32> to vector<128x128xf32>
    %80 = arith.subf %72, %79 : vector<128x128xf32>
    %81 = vector.broadcast %13 : vector<128x1xf32> to vector<128x128xf32>
    %82 = arith.mulf %80, %81 : vector<128x128xf32>
    %83 = arith.mulf %82, %82 : vector<128x128xf32>
    %cst_34 = arith.constant dense<0.000000e+00> : vector<128xf32>
    %84 = vector.multi_reduction <add>, %83, %cst_34 [0] : vector<128x128xf32> to vector<128xf32>
    %85 = vector.shape_cast %84 : vector<128xf32> to vector<1x128xf32>
    %cst_35 = arith.constant 1.562500e-02 : f32
    %86 = vector.broadcast %cst_35 : f32 to vector<1x128xf32>
    %87 = arith.mulf %85, %86 : vector<1x128xf32>
    %c1_36 = arith.constant 1 : index
    %c0_37 = arith.constant 0 : index
    %c0_38 = arith.constant 0 : index
    %88 = vector.load %arg5[%c1_36, %c0_37, %c0_38] : memref<2x1x128xf32, #tpu.memory_space<vmem>>, vector<1x1x128xf32>
    %89 = vector.shape_cast %88 : vector<1x1x128xf32> to vector<1x128xf32>
    %cst_39 = arith.constant 9.99999974E-6 : f32
    %90 = vector.broadcast %cst_39 : f32 to vector<1x128xf32>
    %91 = arith.addf %87, %90 : vector<1x128xf32>
    %92 = math.rsqrt %91 : vector<1x128xf32>
    %93 = arith.mulf %89, %92 : vector<1x128xf32>
    %c1_40 = arith.constant 1 : index
    %c0_41 = arith.constant 0 : index
    %c0_42 = arith.constant 0 : index
    %94 = vector.load %arg6[%c1_40, %c0_41, %c0_42] : memref<2x1x128xf32, #tpu.memory_space<vmem>>, vector<1x1x128xf32>
    %95 = vector.shape_cast %94 : vector<1x1x128xf32> to vector<1x128xf32>
    %96 = arith.mulf %78, %93 : vector<1x128xf32>
    %97 = arith.subf %95, %96 : vector<1x128xf32>
    %98 = vector.broadcast %93 : vector<1x128xf32> to vector<128x128xf32>
    %99 = arith.mulf %72, %98 : vector<128x128xf32>
    %100 = vector.broadcast %97 : vector<1x128xf32> to vector<128x128xf32>
    %101 = arith.addf %99, %100 : vector<128x128xf32>
    %cst_43 = arith.constant 0.000000e+00 : f32
    %102 = vector.broadcast %cst_43 : f32 to vector<128x128xf32>
    %103 = arith.maximumf %101, %102 : vector<128x128xf32>
    %104 = arith.truncf %103 : vector<128x128xf32> to vector<128x128xbf16>
    %cst_44 = arith.constant dense<0.000000e+00> : vector<128x128xf32>
    %105 = tpu.matmul %2, %104, %cst_44 {dimension_numbers = #tpu.dot_dimension_numbers<[1], [0], [0], [1], [0, 0, 1, 1], [], []>} : vector<128x128xbf16>, vector<128x128xbf16>, vector<128x128xf32> -> vector<128x128xf32>
    %106 = vector.broadcast %8 : vector<128x1xf32> to vector<128x128xf32>
    %107 = arith.mulf %105, %106 : vector<128x128xf32>
    %108 = arith.truncf %107 : vector<128x128xf32> to vector<128x128xbf16>
    %109 = tpu.concatenate %108, %104 in 1 : vector<128x128xbf16>, vector<128x128xbf16> -> vector<128x256xbf16>
    %c2 = arith.constant 2 : index
    %c0_45 = arith.constant 0 : index
    %c0_46 = arith.constant 0 : index
    %110 = vector.load %arg3[%c2, %c0_45, %c0_46] : memref<3x256x128xbf16, #tpu.memory_space<vmem>>, vector<1x256x128xbf16>
    %111 = vector.shape_cast %110 : vector<1x256x128xbf16> to vector<256x128xbf16>
    %cst_47 = arith.constant dense<0.000000e+00> : vector<128x128xf32>
    %112 = tpu.matmul %109, %111, %cst_47 {dimension_numbers = #tpu.dot_dimension_numbers<[1], [0], [0], [1], [0, 0, 1, 1], [], []>} : vector<128x256xbf16>, vector<256x128xbf16>, vector<128x128xf32> -> vector<128x128xf32>
    %c2_48 = arith.constant 2 : index
    %c0_49 = arith.constant 0 : index
    %c0_50 = arith.constant 0 : index
    %113 = vector.load %arg4[%c2_48, %c0_49, %c0_50] : memref<3x1x128xf32, #tpu.memory_space<vmem>>, vector<1x1x128xf32>
    %114 = vector.shape_cast %113 : vector<1x1x128xf32> to vector<1x128xf32>
    %115 = vector.broadcast %114 : vector<1x128xf32> to vector<128x128xf32>
    %116 = arith.addf %112, %115 : vector<128x128xf32>
    %c0_51 = arith.constant 0 : index
    %c0_52 = arith.constant 0 : index
    %117 = vector.load %arg7[%c0_51, %c0_52] : memref<128x128xf32, #tpu.memory_space<vmem>>, vector<128x128xf32>
    tpu.vector_store %arg7[%c0_51, %c0_52], %116 {strides = array<i32>} : memref<128x128xf32, #tpu.memory_space<vmem>>, vector<128x128xf32>,
    return
  }
  func.func @transform_1(%arg0: i32) -> (i32, i32) {
    %c0_i32 = arith.constant 0 : i32
    %c0_i32_0 = arith.constant 0 : i32
    %c0_i32_1 = arith.constant 0 : i32
    return %c0_i32, %c0_i32_0 : i32, i32
  }
  func.func @transform_2(%arg0: i32) -> (i32, i32, i32) {
    %c0_i32 = arith.constant 0 : i32
    %c0_i32_0 = arith.constant 0 : i32
    %c0_i32_1 = arith.constant 0 : i32
    %c0_i32_2 = arith.constant 0 : i32
    return %c0_i32, %c0_i32_0, %c0_i32_1 : i32, i32, i32
  }
  func.func @transform_3(%arg0: i32) -> (i32, i32, i32) {
    %c0_i32 = arith.constant 0 : i32
    %c0_i32_0 = arith.constant 0 : i32
    %c0_i32_1 = arith.constant 0 : i32
    %c0_i32_2 = arith.constant 0 : i32
    return %c0_i32, %c0_i32_0, %c0_i32_1 : i32, i32, i32
  }
  func.func @transform_4(%arg0: i32) -> (i32, i32, i32) {
    %c0_i32 = arith.constant 0 : i32
    %c0_i32_0 = arith.constant 0 : i32
    %c0_i32_1 = arith.constant 0 : i32
    %c0_i32_2 = arith.constant 0 : i32
    return %c0_i32, %c0_i32_0, %c0_i32_1 : i32, i32, i32
  }
  func.func @transform_5(%arg0: i32) -> (i32, i32, i32) {
    %c0_i32 = arith.constant 0 : i32
    %c0_i32_0 = arith.constant 0 : i32
    %c0_i32_1 = arith.constant 0 : i32
    %c0_i32_2 = arith.constant 0 : i32
    return %c0_i32, %c0_i32_0, %c0_i32_1 : i32, i32, i32
  }
  func.func @transform_6(%arg0: i32) -> (i32, i32) {
    %c0_i32 = arith.constant 0 : i32
    %c0_i32_0 = arith.constant 0 : i32
    %c0_i32_1 = arith.constant 0 : i32
    return %c0_i32, %c0_i32_0 : i32, i32
  }
}

</mosaic_0001>

<bundles_post_ra>
// kernel: sage_forward.1
= control target key start
LH: loop header
LB: loop body
LE: loop exit
PB: predicated region body
PF: predicated region fallthrough
CT: control target
= control target key end

     0   :  { %11 = vsyncpa [#allocation4], 0  ;;  %s2337_s21 = smov [#allocation3]   ;;  %s3055_s0 = inlined_call_operand.vmem [shape: s8[128,128], index: 0, kind: input, shape index: {}]   ;;  %s3056_s1 = inlined_call_operand.vmem [shape: bf16[128,128], index: 1, kind: input, shape index: {}]   ;;  %s3057_s2 = inlined_call_operand.hbm [shape: bf16[3,256,128], index: 2, kind: input, shape index: {}]   ;;  %s3058_s3 = inlined_call_operand.vmem [shape: f32[3,1,128], index: 3, kind: input, shape index: {}]   ;;  %s3059_s4 = inlined_call_operand.vmem [shape: f32[2,1,128], index: 4, kind: input, shape index: {}]   ;;  %s3060_s5 = inlined_call_operand.vmem [shape: f32[2,1,128], index: 5, kind: input, shape index: {}]   ;;  %s3061_s6 = inlined_call_operand.vmem [shape: f32[128,128], index: 6, kind: output, shape index: {}]  }
   0x1   :  { %s19_s22 = sshll.u32 %s2337_s21, 4  ;;  %s2311_s25 = scalar_lea.hbm %s3057_s2, 6144  ;;  %s20_s22 = int_to_ptr.vmem [resolvable:$true] %s19_s22 }
   0x2   :  { %p2312_p0 = scmp.ne.s32.totalorder %s3057_s2, %s2311_s25  ;;  %p2315_p1 = scmp.lt.u32.totalorder %s2311_s25, %s3057_s2 }
   0x4   :  { %p2317_p2 = pnand %p2315_p1, %p2312_p0 }
   0x6   :  { %2320 = shalt.err (!%p2317_p2)
}
   0x7   :  { %s2321_s30 = scalar_lea.vmem %s20_s22, 6144  ;;  %p2326_p4 = scmp.lt.s32.totalorder %s20_s22, %s20_s22 }
   0x8   :  { %p2322_p3 = scmp.ne.s32.totalorder %s20_s22, %s2321_s30  ;;  %p2327_p5 = scmp.lt.s32.totalorder %s2321_s30, %s2321_s30 }
   0xa   :  { %p2328_p6 = por %p2327_p5, %p2326_p4 }
   0xc   :  { %p2329_p7 = pnand %p2328_p6, %p2322_p3 }
   0xe   :  { %2332 = shalt.err (!%p2329_p7)
}
   0xf   :  { %s2338_s7 = smov 64   ;;  %s2339_s8 = smov 4  }
  0x10   :  { %25 = dma.hbm_to_vmem [thread:$0]  %s3057_s2, 6144, %s20_s22, [#allocation4], %s2338_s7, %s2338_s7, %s2339_s8  }
  0x11   :  { %2333 = dma.done.wait [#allocation4], 6144  }
  0x12   :  { %2334 = vsyncadd [#allocation4], 4294961152 }
  0x13   :  { %v2390_v0 = vld [vmem:[%s3055_s0] sm:$0xff]  ;;  %v2395_v1 = vld [vmem:[%s3055_s0 + $0x8] sm:$0xff]  ;;  %v2400_v2 = vld [vmem:[%s3055_s0 + $0x10] sm:$0xff] }
  0x14   :  { %v2405_v3 = vld [vmem:[%s3055_s0 + $0x18] sm:$0xff] }
  0x15   :  { %83 = vsyncadd [#allocation5], 512 }
  0x16   :  { %2335 = dma.done.wait [#allocation5], 512 }
  0x17   :  { %2336 = vsyncadd [#allocation5], 4294966784  ;;  %v2219_v4 = vld [vmem:[%s3056_s1] sm:$0xff]   ;;  %v2411_v5 = vunpack.c.l.s8.bf16 %v2390_v0  ;;  %v2416_v6 = vld [vmem:[%s3056_s1 + $0x8] sm:$0xff]   ;;  %v94_v7 = vunpack.c.2.s8 %v2390_v0  ;;  %v92_v8 = vunpack.c.0.s8 %v2390_v0  ;;  %v95_v9 = vunpack.c.3.s8 %v2390_v0 }
  0x18   :  { %2104 = vmatprep.subr.bf16.mxu0 %v2219_v4  ;;  %v93_v10 = vunpack.c.1.s8 %v2390_v0  ;;  %629 = vmatprep.mubr.bf16.mxu1 %v2219_v4  ;;  %v2427_v11 = vld [vmem:[%s3056_s1 + $0x10] sm:$0xff]   ;;  %v97_v16 = vunpack.c.1.s8 %v2395_v1  ;;  %v96_v17 = vunpack.c.0.s8 %v2395_v1  ;;  %v2435_v18 = vld [vmem:[%s3056_s1 + $0x18] sm:$0xff]   ;;  %v2227_v19 = vld [vmem:[#allocation3 + $0x40] sm:$0xff]   ;;  %v99_v23 = vunpack.c.3.s8 %v2395_v1 }
  0x19   :  { %2120 = vmatprep.mubr.bf16.mxu0 %v2411_v5  ;;  %2105 = vmatpush3.bf16.msra.mxu0 %v2219_v4  ;;  %v110_v12 = vcvt.s32.f32 %v94_v7  ;;  %v108_v13 = vcvt.s32.f32 %v92_v8  ;;  %v111_v14 = vcvt.s32.f32 %v95_v9  ;;  %v2228_v20 = vld [vmem:[#allocation3] sm:$0xff]   ;;  %v98_v24 = vunpack.c.2.s8 %v2395_v1  ;;  %v2229_v25 = vld [vmem:[#allocation3 + $0x48] sm:$0xff]   ;;  %v2231_v28 = vld [vmem:[#allocation3 + $0x50] sm:$0xff]  }
  0x1a   :  { %2106 = vmatprep.subr.bf16.mxu0 %v2416_v6  ;;  %v109_v15 = vcvt.s32.f32 %v93_v10  ;;  %v113_v21 = vcvt.s32.f32 %v97_v16  ;;  %v112_v22 = vcvt.s32.f32 %v96_v17  ;;  %v2444_v26 = vld [vmem:[%s3056_s1 + $0x20] sm:$0xff]   ;;  %1880 = vmatprep.subr.bf16.mxu1 %v2227_v19  ;;  %v2230_v27 = vld [vmem:[#allocation3 + $0x8] sm:$0xff]   ;;  %v115_v30 = vcvt.s32.f32 %v99_v23  ;;  %v2232_v34 = vld [vmem:[#allocation3 + $0x10] sm:$0xff]  }
  0x1b   :  { %136 = vadd.xlane.f32.xlu1 %v110_v12  ;;  %132 = vadd.xlane.f32.xlu0 %v108_v13  ;;  %v2450_v29 = vld [vmem:[%s3056_s1 + $0x28] sm:$0xff]   ;;  %v114_v31 = vcvt.s32.f32 %v98_v24  ;;  %v101_v32 = vunpack.c.1.s8 %v2400_v2  ;;  %v100_v33 = vunpack.c.0.s8 %v2400_v2  ;;  %v2459_v35 = vld [vmem:[%s3056_s1 + $0x30] sm:$0xff]   ;;  %v103_v38 = vunpack.c.3.s8 %v2400_v2  ;;  %v2468_v40 = vld [vmem:[%s3056_s1 + $0x38] sm:$0xff]  }
  0x1c   :  { %1881 = vmatpush3.bf16.msra.mxu1 %v2228_v20  ;;  %v102_v39 = vunpack.c.2.s8 %v2400_v2  ;;  %v105_v43 = vunpack.c.1.s8 %v2405_v3  ;;  %v104_v44 = vunpack.c.0.s8 %v2405_v3  ;;  %v2233_v45 = vld [vmem:[#allocation3 + $0x58] sm:$0xff]   ;;  %v107_v49 = vunpack.c.3.s8 %v2405_v3  ;;  %v2235_v51 = vld [vmem:[#allocation3 + $0x60] sm:$0xff]   ;;  %v2237_v53 = vld [vmem:[#allocation3 + $0x68] sm:$0xff]  }
  0x1d   :  { %2107 = vmatpush3.bf16.msra.mxu0 %v2416_v6  ;;  %1882 = vmatprep.subr.bf16.mxu1 %v2229_v25  ;;  %v117_v36 = vcvt.s32.f32 %v101_v32  ;;  %v116_v37 = vcvt.s32.f32 %v100_v33  ;;  %v119_v41 = vcvt.s32.f32 %v103_v38  ;;  %v2234_v46 = vld [vmem:[#allocation3 + $0x18] sm:$0xff]   ;;  %v106_v50 = vunpack.c.2.s8 %v2405_v3  ;;  %v2236_v52 = vld [vmem:[#allocation3 + $0x20] sm:$0xff]   ;;  %v2238_v56 = vld [vmem:[#allocation3 + $0x28] sm:$0xff]  }
  0x1e   :  { %2108 = vmatprep.subr.bf16.mxu0 %v2427_v11  ;;  %v118_v42 = vcvt.s32.f32 %v102_v39  ;;  %v121_v47 = vcvt.s32.f32 %v105_v43  ;;  %v120_v48 = vcvt.s32.f32 %v104_v44  ;;  %v2479_v54 = vunpack.c.h.s8.bf16 %v2390_v0  ;;  %v2239_v0 = vld [vmem:[#allocation3 + $0x70] sm:$0xff]   ;;  %v2242_v4 = vld [vmem:[#allocation3 + $0x38] sm:$0xff]  }
  0x1f   :  { %138 = vadd.xlane.f32.xlu1 %v111_v14  ;;  %134 = vadd.xlane.f32.xlu0 %v109_v15  ;;  %v123_v55 = vcvt.s32.f32 %v107_v49  ;;  %v2483_v57 = vunpack.c.l.s8.bf16 %v2395_v1  ;;  %v122_v58 = vcvt.s32.f32 %v106_v50  ;;  %v2488_v59 = vunpack.c.h.s8.bf16 %v2395_v1  ;;  %v2240_v1 = vld [vmem:[#allocation3 + $0x30] sm:$0xff]  }
  0x20   :  { %1883 = vmatpush3.bf16.msra.mxu1 %v2230_v27  ;;  %v2491_v60 = vunpack.c.l.s8.bf16 %v2400_v2  ;;  %v2496_v61 = vunpack.c.h.s8.bf16 %v2400_v2  ;;  %v2499_v62 = vunpack.c.l.s8.bf16 %v2405_v3  ;;  %v2504_v63 = vunpack.c.h.s8.bf16 %v2405_v3  ;;  %v2241_v2 = vld [vmem:[#allocation3 + $0x78] sm:$0xff]  }
  0x21   :  { %2109 = vmatpush3.bf16.msra.mxu0 %v2427_v11  ;;  %1884 = vmatprep.subr.bf16.mxu1 %v2231_v28 }
  0x22   :  { %2110 = vmatprep.subr.bf16.mxu0 %v2435_v18 }
  0x23   :  { %142 = vadd.xlane.f32.xlu1 %v113_v21  ;;  %140 = vadd.xlane.f32.xlu0 %v112_v22 }
  0x24   :  { %1885 = vmatpush3.bf16.msra.mxu1 %v2232_v34 }
  0x25   :  { %2111 = vmatpush3.bf16.msra.mxu0 %v2435_v18  ;;  %1886 = vmatprep.subr.bf16.mxu1 %v2233_v45 }
  0x26   :  { %2112 = vmatprep.subr.bf16.mxu0 %v2444_v26 }
  0x27   :  { %146 = vadd.xlane.f32.xlu1 %v115_v30  ;;  %144 = vadd.xlane.f32.xlu0 %v114_v31 }
  0x28   :  { %1887 = vmatpush3.bf16.msra.mxu1 %v2234_v46 }
  0x29   :  { %2113 = vmatpush3.bf16.msra.mxu0 %v2444_v26  ;;  %1888 = vmatprep.subr.bf16.mxu1 %v2235_v51 }
  0x2a   :  { %2114 = vmatprep.subr.bf16.mxu0 %v2450_v29 }
  0x2b   :  { %150 = vadd.xlane.f32.xlu1 %v117_v36  ;;  %148 = vadd.xlane.f32.xlu0 %v116_v37 }
  0x2c   :  { %1889 = vmatpush3.bf16.msra.mxu1 %v2236_v52 }
  0x2d   :  { %2115 = vmatpush3.bf16.msra.mxu0 %v2450_v29  ;;  %1890 = vmatprep.subr.bf16.mxu1 %v2237_v53 }
  0x2e   :  { %2116 = vmatprep.subr.bf16.mxu0 %v2459_v35 }
  0x2f   :  { %154 = vadd.xlane.f32.xlu1 %v119_v41  ;;  %152 = vadd.xlane.f32.xlu0 %v118_v42 }
  0x30   :  { %1891 = vmatpush3.bf16.msra.mxu1 %v2238_v56 }
  0x31   :  { %2117 = vmatpush3.bf16.msra.mxu0 %v2459_v35  ;;  %1892 = vmatprep.subr.bf16.mxu1 %v2239_v0 }
  0x32   :  { %2118 = vmatprep.subr.bf16.mxu0 %v2468_v40 }
  0x33   :  { %158 = vadd.xlane.f32.xlu1 %v121_v47  ;;  %156 = vadd.xlane.f32.xlu0 %v120_v48 }
  0x34   :  { %1893 = vmatpush3.bf16.msra.mxu1 %v2240_v1 }
  0x35   :  { %2119 = vmatpush3.bf16.msra.mxu0 %v2468_v40  ;;  %1894 = vmatprep.subr.bf16.mxu1 %v2241_v2 }
  0x37   :  { %162 = vadd.xlane.f32.xlu1 %v123_v55  ;;  %160 = vadd.xlane.f32.xlu0 %v122_v58 }
  0x38   :  { %2121 = vmatmul.mubr.bf16.vlgmr.msra.gmra.mrb[0].mxu0 %v2479_v54  ;;  %1895 = vmatpush3.bf16.msra.mxu1 %v2242_v4 }
  0x39   :  { %2124 = vmatprep.mubr.bf16.mxu0 %v2483_v57 }
  0x40   :  { %2125 = vmatmul.mubr.bf16.gmra.mrb[4].mxu0 %v2488_v59 }
  0x41   :  { %2128 = vmatprep.mubr.bf16.mxu0 %v2491_v60 }
  0x48   :  { %2129 = vmatmul.mubr.bf16.gmra.mrb[8].mxu0 %v2496_v61 }
  0x49   :  { %2132 = vmatprep.mubr.bf16.mxu0 %v2499_v62 }
  0x50   :  { %2133 = vmatmul.mubr.bf16.gmra.mrb[12].mxu0 %v2504_v63 }
  0x51   :  { %2152 = vmatprep.mubr.bf16.mxu0 %v2411_v5 }
  0xa8   :  { %v133_v7 = vpop.xlane.xlu0 %132  ;;  %v137_v8 = vpop.xlane.xlu1 %136 }
  0xa9   :  { %v166_v3 = vmax.f32 %v137_v8, 1.0  ;;  %v164_v19 = vmax.f32 %v133_v7, 1.0 }
  0xab   :  { %2275 = vrcp.f32 %v166_v3 }
  0xac   :  { %v135_v9 = vpop.xlane.xlu0 %134  ;;  %v139_v10 = vpop.xlane.xlu1 %138 }
  0xad   :  { %v167_v15 = vmax.f32 %v139_v10, 1.0  ;;  %v165_v16 = vmax.f32 %v135_v9, 1.0 }
  0xaf   :  { %2277 = vrcp.f32 %v167_v15 }
  0xb0   :  { %v141_v12 = vpop.xlane.xlu0 %140  ;;  %v143_v13 = vpop.xlane.xlu1 %142  ;;  %2279 = vrcp.f32 %v165_v16 }
  0xb1   :  { %2281 = vrcp.f32 %v164_v19  ;;  %v168_v23 = vmax.f32 %v141_v12, 1.0  ;;  %v169_v25 = vmax.f32 %v143_v13, 1.0 }
  0xb4   :  { %v145_v14 = vpop.xlane.xlu0 %144  ;;  %v147_v17 = vpop.xlane.xlu1 %146 }
  0xb5   :  { %v170_v22 = vmax.f32 %v145_v14, 1.0  ;;  %v171_v24 = vmax.f32 %v147_v17, 1.0  ;;  %v2508_v30 = vpop.eup %2275 }
  0xb7   :  { %2283 = vrcp.f32 %v170_v22 }
  0xb8   :  { %v149_v20 = vpop.xlane.xlu0 %148  ;;  %v151_v21 = vpop.xlane.xlu1 %150  ;;  %2285 = vrcp.f32 %v168_v23 }
  0xb9   :  { %2287 = vrcp.f32 %v171_v24  ;;  %v2510_v32 = vpop.eup %2277  ;;  %v172_v38 = vmax.f32 %v149_v20, 1.0  ;;  %v173_v47 = vmax.f32 %v151_v21, 1.0 }
  0xba   :  { %2289 = vrcp.f32 %v169_v25  ;;  %v2512_v36 = vpop.eup %2279 }
  0xbb   :  { %v2514_v43 = vpop.eup %2281 }
  0xbc   :  { %v153_v27 = vpop.xlane.xlu0 %152  ;;  %v155_v28 = vpop.xlane.xlu1 %154 }
  0xbd   :  { %v174_v34 = vmax.f32 %v153_v27, 1.0  ;;  %v175_v42 = vmax.f32 %v155_v28, 1.0 }
  0xbf   :  { %2291 = vrcp.f32 %v174_v34 }
  0xc0   :  { %v157_v31 = vpop.xlane.xlu0 %156  ;;  %v159_v39 = vpop.xlane.xlu1 %158  ;;  %2293 = vrcp.f32 %v172_v38 }
  0xc1   :  { %v2520_v52 = vpop.eup %2283  ;;  %2295 = vrcp.f32 %v175_v42  ;;  %v176_v8 = vmax.f32 %v157_v31, 1.0  ;;  %v177_v14 = vmax.f32 %v159_v39, 1.0 }
  0xc2   :  { %v2522_v55 = vpop.eup %2285  ;;  %2297 = vrcp.f32 %v173_v47 }
  0xc3   :  { %3076 = vst [vmem:[#allocation9_spill] sm:$0xff] %v2522_v55  ;;  %v2524_v58 = vpop.eup %2287 }
  0xc4   :  { %v161_v51 = vpop.xlane.xlu0 %160  ;;  %v163_v56 = vpop.xlane.xlu1 %162  ;;  %3077 = vst [vmem:[#allocation10_spill] sm:$0xff] %v2524_v58 }
  0xc5   :  { %v178_v1 = vmax.f32 %v161_v51, 1.0  ;;  %v2526_v2 = vpop.eup %2289  ;;  %v179_v12 = vmax.f32 %v163_v56, 1.0 }
  0xc6   :  { %3078 = vst [vmem:[#allocation11_spill] sm:$0xff] %v2526_v2 }
  0xc7   :  { %2299 = vrcp.f32 %v178_v1 }
  0xc8   :  { %2301 = vrcp.f32 %v176_v8 }
  0xc9   :  { %v2533_v17 = vpop.eup %2291  ;;  %2303 = vrcp.f32 %v179_v12 }
  0xca   :  { %3079 = vst [vmem:[#allocation12_spill] sm:$0xff] %v2533_v17  ;;  %v2535_v20 = vpop.eup %2293  ;;  %2305 = vrcp.f32 %v177_v14 }
  0xcb   :  { %3080 = vst [vmem:[#allocation13_spill] sm:$0xff] %v2535_v20 }
 0x10b   :  { %v2122_v33 = vpop.f32.mrb[0].mxu0 }
 0x10c   :  { %v375_v37 = vpop.f32.mrb[1].mxu0  ;;  %v440_v44 = vmul.f32 %v2508_v30, %v2122_v33 }
 0x10d   :  { %v2123_v41 = vpop.f32.mrb[2].mxu0  ;;  %v438_v48 = vmul.f32 %v2514_v43, %v375_v37 }
 0x10e   :  { %v441_v45 = vmul.f32 %v2510_v32, %v2123_v41  ;;  %v378_v46 = vpop.f32.mrb[3].mxu0 }
 0x10f   :  { %v439_v49 = vmul.f32 %v2512_v36, %v378_v46 }
 0x110   :  { %v455_v50 = vpack.c.bf16 %v441_v45, %v440_v44 }
 0x111   :  { %v454_v53 = vpack.c.bf16 %v439_v49, %v438_v48 }
 0x113   :  { %630 = vmatmul.mubr.bf16.vlgmr.msra.gmra.mrb[0].mxu1 %v454_v53  ;;  %v2126_v0 = vpop.f32.mrb[4].mxu0 }
 0x114   :  { %v444_v4 = vmul.f32 %v2520_v52, %v2126_v0  ;;  %v391_v7 = vpop.f32.mrb[5].mxu0  ;;  %637 = vmatprep.mubr.bf16.mxu1 %v2416_v6  ;;  %v2537_v6 = vpop.eup %2295 }
 0x115   :  { %v442_v9 = vmul.f32 %v2522_v55, %v391_v7  ;;  %v2127_v10 = vpop.f32.mrb[6].mxu0  ;;  %3081 = vst [vmem:[#allocation14_spill] sm:$0xff] %v2537_v6  ;;  %v2539_v22 = vpop.eup %2297 }
 0x116   :  { %v445_v13 = vmul.f32 %v2524_v58, %v2127_v10  ;;  %v394_v3 = vpop.f32.mrb[7].mxu0  ;;  %3082 = vst [vmem:[#allocation15_spill] sm:$0xff] %v2539_v22  ;;  %v2546_v37 = vpop.eup %2299 }
 0x117   :  { %v443_v15 = vmul.f32 %v2526_v2, %v394_v3  ;;  %3083 = vst [vmem:[#allocation16_spill] sm:$0xff] %v2546_v37  ;;  %v2548_v39 = vpop.eup %2301 }
 0x118   :  { %v457_v16 = vpack.c.bf16 %v445_v13, %v444_v4  ;;  %3084 = vst [vmem:[#allocation17_spill] sm:$0xff] %v2548_v39  ;;  %v2550_v41 = vpop.eup %2303 }
 0x119   :  { %v456_v19 = vpack.c.bf16 %v443_v15, %v442_v9  ;;  %3085 = vst [vmem:[#allocation18_spill] sm:$0xff] %v2550_v41  ;;  %v2552_v42 = vpop.eup %2305 }
 0x11a   :  { %3086 = vst [vmem:[#allocation19_spill] sm:$0xff] %v2552_v42 }
 0x11b   :  { %638 = vmatmul.mubr.bf16.gmra.mrb[4].mxu1 %v455_v50  ;;  %v2130_v21 = vpop.f32.mrb[8].mxu0 }
 0x11c   :  { %645 = vmatprep.mubr.bf16.mxu1 %v2427_v11  ;;  %v448_v23 = vmul.f32 %v2533_v17, %v2130_v21  ;;  %v407_v24 = vpop.f32.mrb[9].mxu0 }
 0x11d   :  { %v446_v25 = vmul.f32 %v2535_v20, %v407_v24  ;;  %v2131_v27 = vpop.f32.mrb[10].mxu0 }
 0x11e   :  { %v449_v28 = vmul.f32 %v2537_v6, %v2131_v27  ;;  %v410_v31 = vpop.f32.mrb[11].mxu0 }
 0x11f   :  { %v447_v33 = vmul.f32 %v2539_v22, %v410_v31 }
 0x120   :  { %v459_v34 = vpack.c.bf16 %v449_v28, %v448_v23 }
 0x121   :  { %v458_v38 = vpack.c.bf16 %v447_v33, %v446_v25 }
 0x123   :  { %646 = vmatmul.mubr.bf16.gmra.mrb[8].mxu1 %v456_v19  ;;  %v2134_v11 = vpop.f32.mrb[12].mxu0 }
 0x124   :  { %653 = vmatprep.mubr.bf16.mxu1 %v2435_v18  ;;  %v452_v44 = vmul.f32 %v2546_v37, %v2134_v11  ;;  %v423_v45 = vpop.f32.mrb[13].mxu0 }
 0x125   :  { %v450_v46 = vmul.f32 %v2548_v39, %v423_v45  ;;  %v2135_v47 = vpop.f32.mrb[14].mxu0 }
 0x126   :  { %v453_v48 = vmul.f32 %v2550_v41, %v2135_v47  ;;  %v426_v49 = vpop.f32.mrb[15].mxu0 }
 0x127   :  { %v451_v50 = vmul.f32 %v2552_v42, %v426_v49 }
 0x128   :  { %v461_v51 = vpack.c.bf16 %v453_v48, %v452_v44 }
 0x129   :  { %v460_v53 = vpack.c.bf16 %v451_v50, %v450_v46 }
 0x12b   :  { %654 = vmatmul.mubr.bf16.gmra.mrb[12].mxu1 %v457_v16 }
 0x12c   :  { %661 = vmatprep.mubr.bf16.mxu1 %v2444_v26 }
 0x133   :  { %662 = vmatmul.mubr.bf16.gmra.mrb[16].mxu1 %v458_v38 }
 0x134   :  { %669 = vmatprep.mubr.bf16.mxu1 %v2450_v29 }
 0x13b   :  { %670 = vmatmul.mubr.bf16.gmra.mrb[20].mxu1 %v459_v34 }
 0x13c   :  { %677 = vmatprep.mubr.bf16.mxu1 %v2459_v35 }
 0x143   :  { %678 = vmatmul.mubr.bf16.gmra.mrb[24].mxu1 %v460_v53 }
 0x144   :  { %685 = vmatprep.mubr.bf16.mxu1 %v2468_v40 }
 0x14b   :  { %686 = vmatmul.mubr.bf16.gmra.mrb[28].mxu1 %v461_v51 }
 0x14c   :  { %2184 = vmatprep.mubr.bf16.mxu1 %v2411_v5  ;;  %v2567_v5 = vld [vmem:[%s3058_s3] ss:$0 sm:$0xff] }
 0x1e6   :  { %v1896_v18 = vpop.f32.mrb[0].mxu1 }
 0x1e7   :  { %v1897_v56 = vpop.f32.mrb[1].mxu1 }
 0x1e8   :  { %v1898_v0 = vadd.f32 %v1897_v56, %v1896_v18  ;;  %v1899_v1 = vpop.f32.mrb[2].mxu1 }
 0x1e9   :  { %v1900_v4 = vpop.f32.mrb[3].mxu1 }
 0x1ea   :  { %v1901_v7 = vadd.f32 %v1900_v4, %v1899_v1  ;;  %v2573_v19 = vadd.f32 %v1898_v0, %v2567_v5 }
 0x1ec   :  { %v2570_v16 = vadd.f32 %v1901_v7, %v2567_v5 }
 0x1ee   :  { %v1902_v8 = vpop.f32.mrb[4].mxu1  ;;  %v710_v25 = vadd.f32 %v2570_v16, %v2573_v19 }
 0x1ef   :  { %v1903_v26 = vpop.f32.mrb[5].mxu1 }
 0x1f0   :  { %v1904_v9 = vadd.f32 %v1903_v26, %v1902_v8  ;;  %v1905_v10 = vpop.f32.mrb[6].mxu1 }
 0x1f1   :  { %v1906_v29 = vpop.f32.mrb[7].mxu1 }
 0x1f2   :  { %v1907_v12 = vadd.f32 %v1906_v29, %v1905_v10  ;;  %v2576_v21 = vadd.f32 %v1904_v9, %v2567_v5 }
 0x1f4   :  { %v711_v33 = vadd.f32 %v710_v25, %v2576_v21  ;;  %v2582_v34 = vadd.f32 %v1907_v12, %v2567_v5 }
 0x1f6   :  { %v1908_v13 = vpop.f32.mrb[8].mxu1  ;;  %v712_v44 = vadd.f32 %v711_v33, %v2582_v34 }
 0x1f7   :  { %v1909_v35 = vpop.f32.mrb[9].mxu1 }
 0x1f8   :  { %v1910_v3 = vadd.f32 %v1909_v35, %v1908_v13  ;;  %v1911_v14 = vpop.f32.mrb[10].mxu1 }
 0x1f9   :  { %v1912_v40 = vpop.f32.mrb[11].mxu1 }
 0x1fa   :  { %v1913_v15 = vadd.f32 %v1912_v40, %v1911_v14  ;;  %v2585_v11 = vadd.f32 %v1910_v3, %v2567_v5 }
 0x1fc   :  { %v713_v47 = vadd.f32 %v712_v44, %v2585_v11  ;;  %v2590_v48 = vadd.f32 %v1913_v15, %v2567_v5 }
 0x1fe   :  { %v1914_v23 = vpop.f32.mrb[12].mxu1  ;;  %v714_v56 = vadd.f32 %v713_v47, %v2590_v48 }
 0x1ff   :  { %v1915_v24 = vpop.f32.mrb[13].mxu1 }
 0x200   :  { %v1916_v27 = vadd.f32 %v1915_v24, %v1914_v23  ;;  %v1917_v28 = vpop.f32.mrb[14].mxu1 }
 0x201   :  { %v1918_v31 = vpop.f32.mrb[15].mxu1 }
 0x202   :  { %v1919_v38 = vadd.f32 %v1918_v31, %v1917_v28  ;;  %v2593_v53 = vadd.f32 %v1916_v27, %v2567_v5 }
 0x204   :  { %v715_v1 = vadd.f32 %v714_v56, %v2593_v53  ;;  %v2601_v4 = vadd.f32 %v1919_v38, %v2567_v5 }
 0x206   :  { %v1920_v45 = vpop.f32.mrb[16].mxu1  ;;  %v716_v13 = vadd.f32 %v715_v1, %v2601_v4 }
 0x207   :  { %v1921_v46 = vpop.f32.mrb[17].mxu1 }
 0x208   :  { %v1922_v49 = vadd.f32 %v1921_v46, %v1920_v45  ;;  %v1923_v50 = vpop.f32.mrb[18].mxu1 }
 0x209   :  { %v1924_v51 = vpop.f32.mrb[19].mxu1 }
 0x20a   :  { %v1925_v18 = vadd.f32 %v1924_v51, %v1923_v50  ;;  %v2597_v0 = vadd.f32 %v1922_v49, %v2567_v5 }
 0x20c   :  { %v702_v26 = vmul.f32 0.0, %v2597_v0  ;;  %v2605_v9 = vadd.f32 %v1925_v18, %v2567_v5 }
 0x20e   :  { %v1926_v7 = vpop.f32.mrb[20].mxu1  ;;  %v717_v14 = vadd.f32 %v716_v13, %v702_v26  ;;  %v703_v40 = vmul.f32 0.0, %v2605_v9 }
 0x20f   :  { %v1927_v8 = vpop.f32.mrb[21].mxu1 }
 0x210   :  { %v1928_v10 = vadd.f32 %v1927_v8, %v1926_v7  ;;  %v1929_v29 = vpop.f32.mrb[22].mxu1  ;;  %v718_v27 = vadd.f32 %v717_v14, %v703_v40 }
 0x211   :  { %v1930_v12 = vpop.f32.mrb[23].mxu1 }
 0x212   :  { %v2609_v35 = vadd.f32 %v1928_v10, %v2567_v5  ;;  %v1931_v3 = vadd.f32 %v1930_v12, %v1929_v29 }
 0x214   :  { %v704_v15 = vmul.f32 0.0, %v2609_v35  ;;  %v2614_v23 = vadd.f32 %v1931_v3, %v2567_v5 }
 0x216   :  { %v1932_v24 = vpop.f32.mrb[24].mxu1  ;;  %v719_v38 = vadd.f32 %v718_v27, %v704_v15  ;;  %v705_v44 = vmul.f32 0.0, %v2614_v23 }
 0x217   :  { %v1933_v25 = vpop.f32.mrb[25].mxu1 }
 0x218   :  { %v1934_v28 = vadd.f32 %v1933_v25, %v1932_v24  ;;  %v1935_v31 = vpop.f32.mrb[26].mxu1  ;;  %v720_v50 = vadd.f32 %v719_v38, %v705_v44 }
 0x219   :  { %v1936_v33 = vpop.f32.mrb[27].mxu1 }
 0x21a   :  { %v2618_v45 = vadd.f32 %v1934_v28, %v2567_v5  ;;  %v1937_v46 = vadd.f32 %v1936_v33, %v1935_v31 }
 0x21c   :  { %v706_v47 = vmul.f32 0.0, %v2618_v45  ;;  %v2622_v49 = vadd.f32 %v1937_v46, %v2567_v5 }
 0x21e   :  { %v1938_v51 = vpop.f32.mrb[28].mxu1  ;;  %v721_v56 = vadd.f32 %v720_v50, %v706_v47  ;;  %v707_v1 = vmul.f32 0.0, %v2622_v49 }
 0x21f   :  { %v1939_v18 = vpop.f32.mrb[29].mxu1 }
 0x220   :  { %v1940_v7 = vadd.f32 %v1939_v18, %v1938_v51  ;;  %v1941_v8 = vpop.f32.mrb[30].mxu1  ;;  %v722_v12 = vadd.f32 %v721_v56, %v707_v1 }
 0x221   :  { %v1942_v26 = vpop.f32.mrb[31].mxu1 }
 0x222   :  { %v2626_v10 = vadd.f32 %v1940_v7, %v2567_v5  ;;  %v1943_v29 = vadd.f32 %v1942_v26, %v1941_v8 }
 0x224   :  { %v708_v13 = vmul.f32 0.0, %v2626_v10  ;;  %v2630_v3 = vadd.f32 %v1943_v29, %v2567_v5 }
 0x226   :  { %v723_v14 = vadd.f32 %v722_v12, %v708_v13  ;;  %v709_v40 = vmul.f32 0.0, %v2630_v3 }
 0x228   :  { %v724_v15 = vadd.f32 %v723_v14, %v709_v40 }
 0x22a   :  { %v725_v24 = vrot.slane %v724_v15, 4 }
 0x22c   :  { %v726_v25 = vadd.f32 %v725_v24, %v724_v15 }
 0x22e   :  { %v727_v27 = vrot.slane %v726_v25, 2 }
 0x230   :  { %v728_v28 = vadd.f32 %v727_v27, %v726_v25 }
 0x232   :  { %v729_v31 = vrot.slane %v728_v28, 1 }
 0x234   :  { %v730_v33 = vadd.f32 %v729_v31, %v728_v28 }
 0x236   :  { %v2633_v38 = vmul.f32 0.015625, %v730_v33 }
 0x238   :  { %v732_v44 = vsub.f32 %v2573_v19, %v2633_v38  ;;  %v733_v46 = vsub.f32 %v2570_v16, %v2633_v38  ;;  %v734_v5 = vsub.f32 %v2576_v21, %v2633_v38  ;;  %v735_v51 = vsub.f32 %v2582_v34, %v2633_v38 }
 0x239   :  { %v736_v18 = vsub.f32 %v2585_v11, %v2633_v38  ;;  %v737_v7 = vsub.f32 %v2590_v48, %v2633_v38  ;;  %v738_v29 = vsub.f32 %v2593_v53, %v2633_v38  ;;  %v740_v12 = vsub.f32 %v2597_v0, %v2633_v38 }
 0x23a   :  { %v764_v47 = vmul.f32 %v732_v44, %v732_v44  ;;  %v765_v50 = vmul.f32 %v733_v46, %v733_v46  ;;  %v766_v56 = vmul.f32 %v734_v5, %v734_v5  ;;  %v767_v8 = vmul.f32 %v735_v51, %v735_v51 }
 0x23b   :  { %v768_v13 = vmul.f32 %v736_v18, %v736_v18  ;;  %v739_v40 = vsub.f32 %v2601_v4, %v2633_v38  ;;  %v741_v15 = vsub.f32 %v2605_v9, %v2633_v38  ;;  %v769_v24 = vmul.f32 %v737_v7, %v737_v7 }
 0x23c   :  { %v780_v1 = vadd.f32 %v765_v50, %v764_v47  ;;  %v742_v27 = vsub.f32 %v2609_v35, %v2633_v38  ;;  %v756_v28 = vmul.f32 0.0, %v740_v12  ;;  %v770_v31 = vmul.f32 %v738_v29, %v738_v29 }
 0x23d   :  { %v743_v44 = vsub.f32 %v2614_v23, %v2633_v38  ;;  %v757_v46 = vmul.f32 0.0, %v741_v15  ;;  %v771_v5 = vmul.f32 %v739_v40, %v739_v40  ;;  %v744_v50 = vsub.f32 %v2618_v45, %v2633_v38 }
 0x23e   :  { %v781_v26 = vadd.f32 %v780_v1, %v766_v56  ;;  %v758_v51 = vmul.f32 0.0, %v742_v27  ;;  %v772_v18 = vmul.f32 %v756_v28, %v756_v28  ;;  %v745_v1 = vsub.f32 %v2622_v49, %v2633_v38 }
 0x23f   :  { %v759_v7 = vmul.f32 0.0, %v743_v44  ;;  %v746_v29 = vsub.f32 %v2626_v10, %v2633_v38  ;;  %v760_v12 = vmul.f32 0.0, %v744_v50  ;;  %v747_v40 = vsub.f32 %v2630_v3, %v2633_v38 }
 0x240   :  { %v782_v14 = vadd.f32 %v781_v26, %v767_v8  ;;  %v773_v8 = vmul.f32 %v757_v46, %v757_v46  ;;  %v761_v15 = vmul.f32 0.0, %v745_v1 }
 0x241   :  { %v762_v27 = vmul.f32 0.0, %v746_v29  ;;  %v776_v28 = vmul.f32 %v760_v12, %v760_v12  ;;  %v810_v29 = vlaneseq }
 0x242   :  { %v783_v25 = vadd.f32 %v782_v14, %v768_v13  ;;  %v774_v13 = vmul.f32 %v758_v51, %v758_v51 }
 0x243   :  { %v778_v46 = vmul.f32 %v762_v27, %v762_v27  ;;  %v811_v12 = vshrl.u32 %v810_v29, 7 }
 0x244   :  { %v784_v33 = vadd.f32 %v783_v25, %v769_v24  ;;  %v775_v24 = vmul.f32 %v759_v7, %v759_v7 }
 0x246   :  { %v785_v47 = vadd.f32 %v784_v33, %v770_v31  ;;  %v763_v33 = vmul.f32 0.0, %v747_v40 }
 0x248   :  { %v786_v56 = vadd.f32 %v785_v47, %v771_v5  ;;  %v777_v5 = vmul.f32 %v761_v15, %v761_v15 }
 0x24a   :  { %v787_v26 = vadd.f32 %v786_v56, %v772_v18  ;;  %v779_v18 = vmul.f32 %v763_v33, %v763_v33 }
 0x24c   :  { %v788_v14 = vadd.f32 %v787_v26, %v773_v8 }
 0x24e   :  { %v789_v25 = vadd.f32 %v788_v14, %v774_v13  ;;  %v802_v13 = vld [vmem:[%s3059_s4] sm:$0x1]  ;;  %v2670_v14 = vsub.s32 0, %v811_v12 }
 0x250   :  { %v790_v31 = vadd.f32 %v789_v25, %v775_v24 }
 0x252   :  { %v791_v44 = vadd.f32 %v790_v31, %v776_v28 }
 0x254   :  { %v792_v47 = vadd.f32 %v791_v44, %v777_v5 }
 0x256   :  { %v793_v56 = vadd.f32 %v792_v47, %v778_v46 }
 0x258   :  { %v794_v42 = vadd.f32 %v793_v56, %v779_v18 }
 0x25a   :  { %v795_v50 = vrot.slane %v794_v42, 4 }
 0x25c   :  { %v796_v51 = vadd.f32 %v795_v50, %v794_v42  ;;  %v806_v42 = vld [vmem:[%s3060_s5] sm:$0x1] }
 0x25e   :  { %v797_v8 = vrot.slane %v796_v51, 2 }
 0x260   :  { %v798_v26 = vadd.f32 %v797_v8, %v796_v51 }
 0x262   :  { %v799_v39 = vrot.slane %v798_v26, 1 }
 0x264   :  { %v800_v41 = vadd.f32 %v799_v39, %v798_v26 }
 0x266   :  { %v801_v1 = vmul.f32 0.015625, %v800_v41 }
 0x268   :  { %v803_v7 = vadd.f32 1e-05, %v801_v1 }
 0x26a   :  { %2307 = vrsqrt.f32 %v803_v7 }
 0x274   :  { %v2308_v40 = vpop.eup %2307 }
 0x275   :  { %v805_v15 = vmul.f32 %v2308_v40, %v802_v13 }
 0x277   :  { %v807_v24 = vmul.f32 %v805_v15, %v2633_v38  ;;  %v813_v39 = vrot.slane %v805_v15, %v2670_v14 }
 0x279   :  { %v808_v41 = vsub.f32 %v806_v42, %v807_v24  ;;  %v815_v25 = vmul.f32 %v813_v39, %v2573_v19  ;;  %v816_v28 = vmul.f32 %v813_v39, %v2570_v16  ;;  %v817_v31 = vmul.f32 %v813_v39, %v2576_v21 }
 0x27a   :  { %v818_v33 = vmul.f32 %v813_v39, %v2582_v34  ;;  %v819_v5 = vmul.f32 %v813_v39, %v2585_v11  ;;  %v820_v44 = vmul.f32 %v813_v39, %v2590_v48  ;;  %v821_v16 = vmul.f32 %v813_v39, %v2593_v53 }
 0x27b   :  { %v835_v27 = vrot.slane %v808_v41, %v2670_v14  ;;  %v822_v21 = vmul.f32 %v813_v39, %v2601_v4  ;;  %v823_v12 = vmul.f32 %v813_v39, %v2597_v0  ;;  %v824_v53 = vmul.f32 %v813_v39, %v2605_v9 }
 0x27c   :  { %v825_v24 = vmul.f32 %v813_v39, %v2609_v35  ;;  %v826_v41 = vmul.f32 %v813_v39, %v2614_v23 }
 0x27d   :  { %v837_v46 = vadd.f32 %v835_v27, %v815_v25  ;;  %v838_v47 = vadd.f32 %v835_v27, %v816_v28  ;;  %v839_v38 = vadd.f32 %v835_v27, %v817_v31  ;;  %v840_v18 = vadd.f32 %v835_v27, %v818_v33 }
 0x27e   :  { %v841_v56 = vadd.f32 %v835_v27, %v819_v5  ;;  %v842_v50 = vadd.f32 %v835_v27, %v820_v44  ;;  %v843_v34 = vadd.f32 %v835_v27, %v821_v16  ;;  %v844_v11 = vadd.f32 %v835_v27, %v822_v21  ;;  %v2246_v16 = vld [vmem:[#allocation3 + $0x88] sm:$0xff]   ;;  %v2247_v21 = vld [vmem:[#allocation3 + $0xd0] sm:$0xff]  }
 0x27f   :  { %v853_v51 = vmax.f32 %v837_v46, 0.0  ;;  %v854_v19 = vmax.f32 %v838_v47, 0.0  ;;  %v855_v8 = vmax.f32 %v839_v38, 0.0  ;;  %v856_v26 = vmax.f32 %v840_v18, 0.0 }
 0x280   :  { %v857_v7 = vmax.f32 %v841_v56, 0.0  ;;  %v858_v29 = vmax.f32 %v842_v50, 0.0  ;;  %v859_v13 = vmax.f32 %v843_v34, 0.0  ;;  %v860_v4 = vmax.f32 %v844_v11, 0.0  ;;  %v2248_v34 = vld [vmem:[#allocation3 + $0x90] sm:$0xff]   ;;  %v2249_v11 = vld [vmem:[#allocation3 + $0xd8] sm:$0xff]  }
 0x281   :  { %v2686_v1 = vpack.c.bf16 %v854_v19, %v853_v51  ;;  %v2689_v48 = vpack.c.bf16 %v856_v26, %v855_v8  ;;  %v845_v15 = vadd.f32 %v835_v27, %v823_v12  ;;  %v846_v42 = vadd.f32 %v835_v27, %v824_v53  ;;  %v2252_v12 = vld [vmem:[#allocation3 + $0xa0] sm:$0xff]   ;;  %v2253_v53 = vld [vmem:[#allocation3 + $0xe8] sm:$0xff]  }
 0x282   :  { %v2695_v40 = vpack.c.bf16 %v858_v29, %v857_v7  ;;  %v2701_v25 = vpack.c.bf16 %v860_v4, %v859_v13  ;;  %v847_v31 = vadd.f32 %v835_v27, %v825_v24  ;;  %v848_v9 = vadd.f32 %v835_v27, %v826_v41  ;;  %v2250_v7 = vld [vmem:[#allocation3 + $0x98] sm:$0xff]   ;;  %v2251_v29 = vld [vmem:[#allocation3 + $0xe0] sm:$0xff]   ;;  %v2254_v13 = vld [vmem:[#allocation3 + $0xa8] sm:$0xff]  }
 0x283   :  { %2136 = vmatprep.subr.bf16.mxu0 %v2686_v1  ;;  %v861_v28 = vmax.f32 %v845_v15, 0.0  ;;  %v862_v0 = vmax.f32 %v846_v42, 0.0  ;;  %v827_v33 = vmul.f32 %v813_v39, %v2618_v45  ;;  %v828_v5 = vmul.f32 %v813_v39, %v2622_v49  ;;  %v2255_v4 = vld [vmem:[#allocation3 + $0xf0] sm:$0xff]   ;;  %v2257_v42 = vld [vmem:[#allocation3 + $0xf8] sm:$0xff]  }
 0x284   :  { %2137 = vmatpush3.bf16.msra.mxu0 %v2686_v1  ;;  %v863_v35 = vmax.f32 %v847_v31, 0.0  ;;  %v864_v47 = vmax.f32 %v848_v9, 0.0  ;;  %v830_v38 = vmul.f32 %v813_v39, %v2630_v3  ;;  %v829_v18 = vmul.f32 %v813_v39, %v2626_v10  ;;  %v2243_v10 = vld [vmem:[#allocation3 + $0xc0] sm:$0xff]   ;;  %v2256_v15 = vld [vmem:[#allocation3 + $0xb0] sm:$0xff]   ;;  %v2258_v24 = vld [vmem:[#allocation3 + $0xb8] sm:$0xff]  }
 0x285   :  { %2138 = vmatprep.subr.bf16.mxu0 %v2689_v48  ;;  %v849_v44 = vadd.f32 %v835_v27, %v827_v33  ;;  %v2707_v46 = vpack.c.bf16 %v862_v0, %v861_v28  ;;  %v850_v23 = vadd.f32 %v835_v27, %v828_v5  ;;  %v2244_v39 = vld [vmem:[#allocation3 + $0x80] sm:$0xff]  }
 0x286   :  { %v852_v56 = vadd.f32 %v835_v27, %v830_v38  ;;  %v2713_v45 = vpack.c.bf16 %v864_v47, %v863_v35  ;;  %v851_v49 = vadd.f32 %v835_v27, %v829_v18  ;;  %v2245_v27 = vld [vmem:[#allocation3 + $0xc8] sm:$0xff]  }
 0x287   :  { %v865_v50 = vmax.f32 %v849_v44, 0.0  ;;  %v866_v51 = vmax.f32 %v850_v23, 0.0 }
 0x288   :  { %2139 = vmatpush3.bf16.msra.mxu0 %v2689_v48  ;;  %v867_v8 = vmax.f32 %v851_v49, 0.0  ;;  %v868_v3 = vmax.f32 %v852_v56, 0.0 }
 0x289   :  { %2140 = vmatprep.subr.bf16.mxu0 %v2695_v40  ;;  %v2717_v19 = vpack.c.bf16 %v866_v51, %v865_v50 }
 0x28a   :  { %v2721_v26 = vpack.c.bf16 %v868_v3, %v867_v8 }
 0x28c   :  { %2141 = vmatpush3.bf16.msra.mxu0 %v2695_v40 }
 0x28d   :  { %2142 = vmatprep.subr.bf16.mxu0 %v2701_v25 }
 0x290   :  { %2143 = vmatpush3.bf16.msra.mxu0 %v2701_v25 }
 0x291   :  { %2144 = vmatprep.subr.bf16.mxu0 %v2707_v46 }
 0x294   :  { %2145 = vmatpush3.bf16.msra.mxu0 %v2707_v46 }
 0x295   :  { %2146 = vmatprep.subr.bf16.mxu0 %v2713_v45 }
 0x298   :  { %2147 = vmatpush3.bf16.msra.mxu0 %v2713_v45 }
 0x299   :  { %2148 = vmatprep.subr.bf16.mxu0 %v2717_v19 }
 0x29c   :  { %2149 = vmatpush3.bf16.msra.mxu0 %v2717_v19 }
 0x29d   :  { %2150 = vmatprep.subr.bf16.mxu0 %v2721_v26 }
 0x2a0   :  { %2151 = vmatpush3.bf16.msra.mxu0 %v2721_v26 }
 0x2a1   :  { %1960 = vmatprep.subr.bf16.mxu0 %v2243_v10 }
 0x2a3   :  { %2153 = vmatmul.mubr.bf16.vlgmr.msra.gmra.mrb[16].mxu0 %v2479_v54 }
 0x2a4   :  { %2156 = vmatprep.mubr.bf16.mxu0 %v2483_v57  ;;  %1961 = vmatpush3.bf16.msra.mxu0 %v2244_v39 }
 0x2a5   :  { %1962 = vmatprep.subr.bf16.mxu0 %v2245_v27 }
 0x2a8   :  { %1963 = vmatpush3.bf16.msra.mxu0 %v2246_v16 }
 0x2a9   :  { %1964 = vmatprep.subr.bf16.mxu0 %v2247_v21 }
 0x2ab   :  { %2157 = vmatmul.mubr.bf16.gmra.mrb[20].mxu0 %v2488_v59 }
 0x2ac   :  { %2160 = vmatprep.mubr.bf16.mxu0 %v2491_v60  ;;  %1965 = vmatpush3.bf16.msra.mxu0 %v2248_v34 }
 0x2ad   :  { %1966 = vmatprep.subr.bf16.mxu0 %v2249_v11 }
 0x2b0   :  { %1967 = vmatpush3.bf16.msra.mxu0 %v2250_v7 }
 0x2b1   :  { %1968 = vmatprep.subr.bf16.mxu0 %v2251_v29 }
 0x2b3   :  { %2161 = vmatmul.mubr.bf16.gmra.mrb[24].mxu0 %v2496_v61 }
 0x2b4   :  { %2164 = vmatprep.mubr.bf16.mxu0 %v2499_v62  ;;  %1969 = vmatpush3.bf16.msra.mxu0 %v2252_v12 }
 0x2b5   :  { %1970 = vmatprep.subr.bf16.mxu0 %v2253_v53 }
 0x2b8   :  { %1971 = vmatpush3.bf16.msra.mxu0 %v2254_v13 }
 0x2b9   :  { %1972 = vmatprep.subr.bf16.mxu0 %v2255_v4  ;;  %v3087_v4 = vld [vmem:[#allocation18_spill] sm:$0xff] }
 0x2bb   :  { %2165 = vmatmul.mubr.bf16.gmra.mrb[28].mxu0 %v2504_v63 }
 0x2bc   :  { %1167 = vmatprep.mubr.bf16.mxu0 %v2686_v1  ;;  %1973 = vmatpush3.bf16.msra.mxu0 %v2256_v15 }
 0x2bd   :  { %1974 = vmatprep.subr.bf16.mxu0 %v2257_v42 }
 0x2c0   :  { %1975 = vmatpush3.bf16.msra.mxu0 %v2258_v24  ;;  %v3088_v24 = vld [vmem:[#allocation17_spill] sm:$0xff] }
 0x376   :  { %v2154_v41 = vpop.f32.mrb[16].mxu0 }
 0x377   :  { %v911_v28 = vpop.f32.mrb[17].mxu0  ;;  %v976_v31 = vmul.f32 %v2508_v30, %v2154_v41 }
 0x378   :  { %v2155_v0 = vpop.f32.mrb[18].mxu0  ;;  %v974_v5 = vmul.f32 %v2514_v43, %v911_v28  ;;  %v3089_v28 = vld [vmem:[#allocation19_spill] sm:$0xff] }
 0x379   :  { %v977_v9 = vmul.f32 %v2510_v32, %v2155_v0  ;;  %v914_v33 = vpop.f32.mrb[19].mxu0 }
 0x37a   :  { %v975_v1 = vmul.f32 %v2512_v36, %v914_v33 }
 0x37b   :  { %v991_v44 = vpack.c.bf16 %v977_v9, %v976_v31 }
 0x37c   :  { %v990_v35 = vpack.c.bf16 %v975_v1, %v974_v5 }
 0x37e   :  { %v2158_v47 = vpop.f32.mrb[20].mxu0  ;;  %1168 = vmatmul.mubr.bf16.vlgmr.msra.gmra.mrb[32].mxu0 %v990_v35 }
 0x37f   :  { %v927_v23 = vpop.f32.mrb[21].mxu0  ;;  %1175 = vmatprep.mubr.bf16.mxu0 %v2689_v48  ;;  %v980_v18 = vmul.f32 %v2520_v52, %v2158_v47 }
 0x380   :  { %v2159_v38 = vpop.f32.mrb[22].mxu0  ;;  %v978_v51 = vmul.f32 %v2522_v55, %v927_v23 }
 0x381   :  { %v981_v56 = vmul.f32 %v2524_v58, %v2159_v38  ;;  %v930_v50 = vpop.f32.mrb[23].mxu0 }
 0x382   :  { %v979_v49 = vmul.f32 %v2526_v2, %v930_v50 }
 0x383   :  { %v993_v8 = vpack.c.bf16 %v981_v56, %v980_v18 }
 0x384   :  { %v992_v3 = vpack.c.bf16 %v979_v49, %v978_v51 }
 0x386   :  { %v2162_v10 = vpop.f32.mrb[24].mxu0  ;;  %1176 = vmatmul.mubr.bf16.gmra.mrb[36].mxu0 %v991_v44 }
 0x387   :  { %v943_v39 = vpop.f32.mrb[25].mxu0  ;;  %1183 = vmatprep.mubr.bf16.mxu0 %v2695_v40  ;;  %v984_v48 = vmul.f32 %v2533_v17, %v2162_v10 }
 0x388   :  { %v2163_v27 = vpop.f32.mrb[26].mxu0  ;;  %v982_v34 = vmul.f32 %v2535_v20, %v943_v39 }
 0x389   :  { %v985_v16 = vmul.f32 %v2537_v6, %v2163_v27  ;;  %v946_v21 = vpop.f32.mrb[27].mxu0 }
 0x38a   :  { %v983_v11 = vmul.f32 %v2539_v22, %v946_v21 }
 0x38b   :  { %v995_v7 = vpack.c.bf16 %v985_v16, %v984_v48 }
 0x38c   :  { %v994_v29 = vpack.c.bf16 %v983_v11, %v982_v34 }
 0x38e   :  { %v2166_v12 = vpop.f32.mrb[28].mxu0  ;;  %1184 = vmatmul.mubr.bf16.gmra.mrb[40].mxu0 %v992_v3 }
 0x38f   :  { %v959_v53 = vpop.f32.mrb[29].mxu0  ;;  %1191 = vmatprep.mubr.bf16.mxu0 %v2701_v25  ;;  %v988_v40 = vmul.f32 %v2546_v37, %v2166_v12 }
 0x390   :  { %v2167_v13 = vpop.f32.mrb[30].mxu0  ;;  %v986_v41 = vmul.f32 %v3088_v24, %v959_v53 }
 0x391   :  { %v989_v15 = vmul.f32 %v3087_v4, %v2167_v13  ;;  %v962_v42 = vpop.f32.mrb[31].mxu0 }
 0x392   :  { %v987_v0 = vmul.f32 %v3089_v28, %v962_v42 }
 0x393   :  { %v997_v31 = vpack.c.bf16 %v989_v15, %v988_v40 }
 0x394   :  { %v996_v9 = vpack.c.bf16 %v987_v0, %v986_v41 }
 0x396   :  { %1192 = vmatmul.mubr.bf16.gmra.mrb[44].mxu0 %v993_v8 }
 0x397   :  { %1199 = vmatprep.mubr.bf16.mxu0 %v2707_v46 }
 0x39e   :  { %1200 = vmatmul.mubr.bf16.gmra.mrb[48].mxu0 %v994_v29 }
 0x39f   :  { %1207 = vmatprep.mubr.bf16.mxu0 %v2713_v45 }
 0x3a6   :  { %1208 = vmatmul.mubr.bf16.gmra.mrb[52].mxu0 %v995_v7 }
 0x3a7   :  { %1215 = vmatprep.mubr.bf16.mxu0 %v2717_v19 }
 0x3ae   :  { %1216 = vmatmul.mubr.bf16.gmra.mrb[56].mxu0 %v996_v9 }
 0x3af   :  { %1223 = vmatprep.mubr.bf16.mxu0 %v2721_v26  ;;  %v2760_v26 = vld [vmem:[%s3058_s3 + $0x1] ss:$0 sm:$0xff] }
 0x3b6   :  { %1224 = vmatmul.mubr.bf16.gmra.mrb[60].mxu0 %v997_v31 }
 0x451   :  { %v1976_v25 = vpop.f32.mrb[32].mxu0 }
 0x452   :  { %v1977_v33 = vpop.f32.mrb[33].mxu0 }
 0x453   :  { %v1978_v5 = vadd.f32 %v1977_v33, %v1976_v25  ;;  %v1979_v1 = vpop.f32.mrb[34].mxu0 }
 0x454   :  { %v1980_v44 = vpop.f32.mrb[35].mxu0 }
 0x455   :  { %v1981_v35 = vadd.f32 %v1980_v44, %v1979_v1  ;;  %v2766_v10 = vadd.f32 %v1978_v5, %v2760_v26 }
 0x457   :  { %v2763_v3 = vadd.f32 %v1981_v35, %v2760_v26 }
 0x459   :  { %v1982_v47 = vpop.f32.mrb[36].mxu0  ;;  %v1248_v16 = vadd.f32 %v2763_v3, %v2766_v10 }
 0x45a   :  { %v1983_v23 = vpop.f32.mrb[37].mxu0 }
 0x45b   :  { %v1984_v38 = vadd.f32 %v1983_v23, %v1982_v47  ;;  %v1985_v46 = vpop.f32.mrb[38].mxu0 }
 0x45c   :  { %v1986_v18 = vpop.f32.mrb[39].mxu0 }
 0x45d   :  { %v1987_v56 = vadd.f32 %v1986_v18, %v1985_v46  ;;  %v2769_v39 = vadd.f32 %v1984_v38, %v2760_v26 }
 0x45f   :  { %v1249_v7 = vadd.f32 %v1248_v16, %v2769_v39  ;;  %v2775_v29 = vadd.f32 %v1987_v56, %v2760_v26 }
 0x461   :  { %v1988_v45 = vpop.f32.mrb[40].mxu0  ;;  %v1250_v13 = vadd.f32 %v1249_v7, %v2775_v29 }
 0x462   :  { %v1989_v50 = vpop.f32.mrb[41].mxu0 }
 0x463   :  { %v1990_v51 = vadd.f32 %v1989_v50, %v1988_v45  ;;  %v1991_v19 = vpop.f32.mrb[42].mxu0 }
 0x464   :  { %v1992_v49 = vpop.f32.mrb[43].mxu0 }
 0x465   :  { %v1993_v8 = vadd.f32 %v1992_v49, %v1991_v19  ;;  %v2778_v53 = vadd.f32 %v1990_v51, %v2760_v26 }
 0x467   :  { %v1251_v42 = vadd.f32 %v1250_v13, %v2778_v53  ;;  %v2783_v41 = vadd.f32 %v1993_v8, %v2760_v26 }
 0x469   :  { %v1994_v27 = vpop.f32.mrb[44].mxu0  ;;  %v1252_v5 = vadd.f32 %v1251_v42, %v2783_v41 }
 0x46a   :  { %v1995_v48 = vpop.f32.mrb[45].mxu0 }
 0x46b   :  { %v1996_v21 = vadd.f32 %v1995_v48, %v1994_v27  ;;  %v1997_v34 = vpop.f32.mrb[46].mxu0 }
 0x46c   :  { %v1998_v11 = vpop.f32.mrb[47].mxu0 }
 0x46d   :  { %v1999_v12 = vadd.f32 %v1998_v11, %v1997_v34  ;;  %v2786_v25 = vadd.f32 %v1996_v21, %v2760_v26 }
 0x46f   :  { %v1253_v44 = vadd.f32 %v1252_v5, %v2786_v25  ;;  %v2794_v35 = vadd.f32 %v1999_v12, %v2760_v26 }
 0x471   :  { %v2000_v40 = vpop.f32.mrb[48].mxu0  ;;  %v1254_v50 = vadd.f32 %v1253_v44, %v2794_v35 }
 0x472   :  { %v2001_v15 = vpop.f32.mrb[49].mxu0 }
 0x473   :  { %v2002_v0 = vadd.f32 %v2001_v15, %v2000_v40  ;;  %v2003_v31 = vpop.f32.mrb[50].mxu0 }
 0x474   :  { %v2004_v9 = vpop.f32.mrb[51].mxu0 }
 0x475   :  { %v2005_v33 = vadd.f32 %v2004_v9, %v2003_v31  ;;  %v2790_v1 = vadd.f32 %v2002_v0, %v2760_v26 }
 0x477   :  { %v1240_v38 = vmul.f32 0.0, %v2790_v1  ;;  %v2798_v46 = vadd.f32 %v2005_v33, %v2760_v26 }
 0x479   :  { %v2006_v47 = vpop.f32.mrb[52].mxu0  ;;  %v1255_v49 = vadd.f32 %v1254_v50, %v1240_v38  ;;  %v1241_v8 = vmul.f32 0.0, %v2798_v46 }
 0x47a   :  { %v2007_v23 = vpop.f32.mrb[53].mxu0 }
 0x47b   :  { %v2008_v18 = vadd.f32 %v2007_v23, %v2006_v47  ;;  %v2009_v56 = vpop.f32.mrb[54].mxu0  ;;  %v1256_v34 = vadd.f32 %v1255_v49, %v1241_v8 }
 0x47c   :  { %v2010_v45 = vpop.f32.mrb[55].mxu0 }
 0x47d   :  { %v2802_v51 = vadd.f32 %v2008_v18, %v2760_v26  ;;  %v2011_v19 = vadd.f32 %v2010_v45, %v2009_v56 }
 0x47f   :  { %v1242_v27 = vmul.f32 0.0, %v2802_v51  ;;  %v2807_v48 = vadd.f32 %v2011_v19, %v2760_v26 }
 0x481   :  { %v2012_v16 = vpop.f32.mrb[56].mxu0  ;;  %v1257_v13 = vadd.f32 %v1256_v34, %v1242_v27  ;;  %v1243_v40 = vmul.f32 0.0, %v2807_v48 }
 0x482   :  { %v2013_v21 = vpop.f32.mrb[57].mxu0 }
 0x483   :  { %v2014_v11 = vadd.f32 %v2013_v21, %v2012_v16  ;;  %v2015_v7 = vpop.f32.mrb[58].mxu0  ;;  %v1258_v9 = vadd.f32 %v1257_v13, %v1243_v40 }
 0x484   :  { %v2016_v12 = vpop.f32.mrb[59].mxu0 }
 0x485   :  { %v2811_v15 = vadd.f32 %v2014_v11, %v2760_v26  ;;  %v2017_v42 = vadd.f32 %v2016_v12, %v2015_v7 }
 0x487   :  { %v1244_v0 = vmul.f32 0.0, %v2811_v15  ;;  %v2815_v31 = vadd.f32 %v2017_v42, %v2760_v26 }
 0x489   :  { %v2018_v33 = vpop.f32.mrb[60].mxu0  ;;  %v1259_v44 = vadd.f32 %v1258_v9, %v1244_v0  ;;  %v1245_v47 = vmul.f32 0.0, %v2815_v31 }
 0x48a   :  { %v2019_v5 = vpop.f32.mrb[61].mxu0 }
 0x48b   :  { %v2020_v23 = vadd.f32 %v2019_v5, %v2018_v33  ;;  %v2021_v38 = vpop.f32.mrb[62].mxu0  ;;  %v1260_v50 = vadd.f32 %v1259_v44, %v1245_v47 }
 0x48c   :  { %v2022_v18 = vpop.f32.mrb[63].mxu0 }
 0x48d   :  { %v2819_v56 = vadd.f32 %v2020_v23, %v2760_v26  ;;  %v2023_v45 = vadd.f32 %v2022_v18, %v2021_v38  ;;  %v2838_v38 = vld [vmem:[#allocation3 + $0x140] sm:$0xff]  }
 0x48e   :  { %v2840_v18 = vld [vmem:[#allocation3 + $0x100] sm:$0xff]   ;;  %2040 = vmatprep.subr.bf16.mxu0 %v2838_v38 }
 0x48f   :  { %v1246_v19 = vmul.f32 0.0, %v2819_v56  ;;  %v2823_v49 = vadd.f32 %v2023_v45, %v2760_v26  ;;  %v2842_v45 = vld [vmem:[#allocation3 + $0x148] sm:$0xff]   ;;  %2041 = vmatpush3.bf16.msra.mxu0 %v2840_v18 }
 0x490   :  { %2042 = vmatprep.subr.bf16.mxu0 %v2842_v45 }
 0x491   :  { %v1261_v8 = vadd.f32 %v1260_v50, %v1246_v19  ;;  %v1247_v27 = vmul.f32 0.0, %v2823_v49 }
 0x493   :  { %v1262_v16 = vadd.f32 %v1261_v8, %v1247_v27  ;;  %v2848_v27 = vld [vmem:[#allocation3 + $0x108] sm:$0xff]  }
 0x494   :  { %2043 = vmatpush3.bf16.msra.mxu0 %v2848_v27 }
 0x495   :  { %v1263_v21 = vrot.slane %v1262_v16, 4 }
 0x497   :  { %v1264_v34 = vadd.f32 %v1263_v21, %v1262_v16 }
 0x499   :  { %v1265_v11 = vrot.slane %v1264_v34, 2 }
 0x49b   :  { %v1266_v7 = vadd.f32 %v1265_v11, %v1264_v34 }
 0x49d   :  { %v1267_v12 = vrot.slane %v1266_v7, 1 }
 0x49f   :  { %v1268_v13 = vadd.f32 %v1267_v12, %v1266_v7  ;;  %v2855_v7 = vld [vmem:[#allocation3 + $0x150] sm:$0xff]  }
 0x4a0   :  { %2044 = vmatprep.subr.bf16.mxu0 %v2855_v7 }
 0x4a1   :  { %v2826_v40 = vmul.f32 0.015625, %v1268_v13 }
 0x4a3   :  { %v1270_v42 = vsub.f32 %v2766_v10, %v2826_v40  ;;  %v1271_v0 = vsub.f32 %v2763_v3, %v2826_v40  ;;  %v1272_v26 = vsub.f32 %v2769_v39, %v2826_v40  ;;  %v1273_v5 = vsub.f32 %v2775_v29, %v2826_v40 }
 0x4a4   :  { %v1274_v44 = vsub.f32 %v2778_v53, %v2826_v40  ;;  %v1275_v50 = vsub.f32 %v2783_v41, %v2826_v40  ;;  %v1276_v16 = vsub.f32 %v2786_v25, %v2826_v40  ;;  %v1278_v21 = vsub.f32 %v2790_v1, %v2826_v40 }
 0x4a5   :  { %v1302_v9 = vmul.f32 %v1270_v42, %v1270_v42  ;;  %v1303_v33 = vmul.f32 %v1271_v0, %v1271_v0  ;;  %v1304_v47 = vmul.f32 %v1272_v26, %v1272_v26  ;;  %v1305_v19 = vmul.f32 %v1273_v5, %v1273_v5  ;;  %v2862_v26 = vld [vmem:[#allocation3 + $0x110] sm:$0xff]  }
 0x4a6   :  { %v1306_v34 = vmul.f32 %v1274_v44, %v1274_v44  ;;  %v1277_v12 = vsub.f32 %v2794_v35, %v2826_v40  ;;  %v1279_v13 = vsub.f32 %v2798_v46, %v2826_v40  ;;  %v1307_v42 = vmul.f32 %v1275_v50, %v1275_v50  ;;  %2045 = vmatpush3.bf16.msra.mxu0 %v2862_v26 }
 0x4a7   :  { %v1318_v23 = vadd.f32 %v1303_v33, %v1302_v9  ;;  %v1280_v9 = vsub.f32 %v2802_v51, %v2826_v40  ;;  %v1294_v33 = vmul.f32 0.0, %v1278_v21  ;;  %v1308_v5 = vmul.f32 %v1276_v16, %v1276_v16 }
 0x4a8   :  { %v1309_v50 = vmul.f32 %v1277_v12, %v1277_v12  ;;  %v1283_v28 = vsub.f32 %v2815_v31, %v2826_v40  ;;  %v1284_v24 = vsub.f32 %v2819_v56, %v2826_v40  ;;  %v1285_v4 = vsub.f32 %v2823_v49, %v2826_v40 }
 0x4a9   :  { %v1319_v8 = vadd.f32 %v1318_v23, %v1304_v47  ;;  %v2867_v47 = vld [vmem:[#allocation3 + $0x158] sm:$0xff]   ;;  %v1281_v23 = vsub.f32 %v2807_v48, %v2826_v40  ;;  %v1296_v21 = vmul.f32 0.0, %v1280_v9  ;;  %v1310_v16 = vmul.f32 %v1294_v33, %v1294_v33 }
 0x4aa   :  { %2046 = vmatprep.subr.bf16.mxu0 %v2867_v47  ;;  %v1300_v37 = vmul.f32 0.0, %v1284_v24 }
 0x4ab   :  { %v1320_v11 = vadd.f32 %v1319_v8, %v1305_v19  ;;  %v1295_v19 = vmul.f32 0.0, %v1279_v13  ;;  %v1297_v13 = vmul.f32 0.0, %v1281_v23  ;;  %v1312_v33 = vmul.f32 %v1296_v21, %v1296_v21 }
 0x4ac   :  { %v1299_v23 = vmul.f32 0.0, %v1283_v28 }
 0x4ad   :  { %v1321_v0 = vadd.f32 %v1320_v11, %v1306_v34  ;;  %v2872_v34 = vld [vmem:[#allocation3 + $0x118] sm:$0xff]   ;;  %v1282_v11 = vsub.f32 %v2811_v15, %v2826_v40  ;;  %v1311_v12 = vmul.f32 %v1295_v19, %v1295_v19  ;;  %v1313_v19 = vmul.f32 %v1297_v13, %v1297_v13 }
 0x4ae   :  { %2047 = vmatpush3.bf16.msra.mxu0 %v2872_v34  ;;  %v1315_v21 = vmul.f32 %v1299_v23, %v1299_v23 }
 0x4af   :  { %v1322_v44 = vadd.f32 %v1321_v0, %v1307_v42  ;;  %v2877_v0 = vld [vmem:[#allocation3 + $0x160] sm:$0xff]   ;;  %v1298_v9 = vmul.f32 0.0, %v1282_v11  ;;  %v1301_v11 = vmul.f32 0.0, %v1285_v4 }
 0x4b0   :  { %2048 = vmatprep.subr.bf16.mxu0 %v2877_v0 }
 0x4b1   :  { %v1323_v8 = vadd.f32 %v1322_v44, %v1308_v5  ;;  %v2882_v44 = vld [vmem:[#allocation3 + $0x120] sm:$0xff]   ;;  %v1314_v22 = vmul.f32 %v1298_v9, %v1298_v9  ;;  %v1317_v17 = vmul.f32 %v1301_v11, %v1301_v11 }
 0x4b2   :  { %2049 = vmatpush3.bf16.msra.mxu0 %v2882_v44 }
 0x4b3   :  { %v1324_v42 = vadd.f32 %v1323_v8, %v1309_v50  ;;  %v2887_v8 = vld [vmem:[#allocation3 + $0x168] sm:$0xff]  }
 0x4b4   :  { %2050 = vmatprep.subr.bf16.mxu0 %v2887_v8 }
 0x4b5   :  { %v1325_v5 = vadd.f32 %v1324_v42, %v1310_v16  ;;  %v2892_v42 = vld [vmem:[#allocation3 + $0x128] sm:$0xff]  }
 0x4b6   :  { %2051 = vmatpush3.bf16.msra.mxu0 %v2892_v42 }
 0x4b7   :  { %v1326_v50 = vadd.f32 %v1325_v5, %v1311_v12  ;;  %v1316_v5 = vmul.f32 %v1300_v37, %v1300_v37 }
 0x4b9   :  { %v1327_v16 = vadd.f32 %v1326_v50, %v1312_v33 }
 0x4bb   :  { %v1328_v20 = vadd.f32 %v1327_v16, %v1313_v19 }
 0x4bd   :  { %v1329_v12 = vadd.f32 %v1328_v20, %v1314_v22  ;;  %v1844_v20 = vld [vmem:[%s3059_s4 + $0x1] sm:$0x1] }
 0x4bf   :  { %v1330_v6 = vadd.f32 %v1329_v12, %v1315_v21 }
 0x4c1   :  { %v1331_v28 = vadd.f32 %v1330_v6, %v1316_v5  ;;  %v1845_v6 = vld [vmem:[%s3060_s5 + $0x1] sm:$0x1] }
 0x4c3   :  { %v1332_v13 = vadd.f32 %v1331_v28, %v1317_v17 }
 0x4c5   :  { %v1333_v33 = vrot.slane %v1332_v13, 4 }
 0x4c7   :  { %v1334_v50 = vadd.f32 %v1333_v33, %v1332_v13 }
 0x4c9   :  { %v1335_v2 = vrot.slane %v1334_v50, 2 }
 0x4cb   :  { %v1336_v55 = vadd.f32 %v1335_v2, %v1334_v50 }
 0x4cd   :  { %v1337_v58 = vrot.slane %v1336_v55, 1 }
 0x4cf   :  { %v1338_v24 = vadd.f32 %v1337_v58, %v1336_v55 }
 0x4d1   :  { %v1339_v9 = vmul.f32 0.015625, %v1338_v24 }
 0x4d3   :  { %v1342_v19 = vadd.f32 1e-05, %v1339_v9 }
 0x4d5   :  { %2309 = vrsqrt.f32 %v1342_v19 }
 0x4df   :  { %v2310_v22 = vpop.eup %2309 }
 0x4e0   :  { %v1344_v4 = vmul.f32 %v2310_v22, %v1844_v20 }
 0x4e2   :  { %v1347_v17 = vmul.f32 %v1344_v4, %v2826_v40  ;;  %v1353_v37 = vrot.slane %v1344_v4, %v2670_v14 }
 0x4e4   :  { %v1348_v2 = vsub.f32 %v1845_v6, %v1347_v17  ;;  %v1355_v55 = vmul.f32 %v1353_v37, %v2766_v10  ;;  %v1356_v23 = vmul.f32 %v1353_v37, %v2763_v3  ;;  %v1357_v16 = vmul.f32 %v1353_v37, %v2769_v39 }
 0x4e5   :  { %v1358_v11 = vmul.f32 %v1353_v37, %v2775_v29  ;;  %v1359_v21 = vmul.f32 %v1353_v37, %v2778_v53  ;;  %v1360_v12 = vmul.f32 %v1353_v37, %v2783_v41  ;;  %v1361_v3 = vmul.f32 %v1353_v37, %v2786_v25 }
 0x4e6   :  { %v1375_v58 = vrot.slane %v1348_v2, %v2670_v14  ;;  %v1362_v39 = vmul.f32 %v1353_v37, %v2794_v35  ;;  %v1363_v4 = vmul.f32 %v1353_v37, %v2790_v1  ;;  %v1364_v6 = vmul.f32 %v1353_v37, %v2798_v46 }
 0x4e7   :  { %v1367_v46 = vmul.f32 %v1353_v37, %v2811_v15 }
 0x4e8   :  { %v1377_v5 = vadd.f32 %v1375_v58, %v1355_v55  ;;  %v1378_v28 = vadd.f32 %v1375_v58, %v1356_v23  ;;  %v1379_v40 = vadd.f32 %v1375_v58, %v1357_v16  ;;  %v1380_v13 = vadd.f32 %v1375_v58, %v1358_v11 }
 0x4e9   :  { %v1381_v33 = vadd.f32 %v1375_v58, %v1359_v21  ;;  %v1382_v50 = vadd.f32 %v1375_v58, %v1360_v12  ;;  %v1383_v29 = vadd.f32 %v1375_v58, %v1361_v3  ;;  %v1384_v20 = vadd.f32 %v1375_v58, %v1362_v39 }
 0x4ea   :  { %v1393_v24 = vmax.f32 %v1377_v5, 0.0  ;;  %v1394_v10 = vmax.f32 %v1378_v28, 0.0  ;;  %v1395_v9 = vmax.f32 %v1379_v40, 0.0  ;;  %v1396_v14 = vmax.f32 %v1380_v13, 0.0 }
 0x4eb   :  { %v1397_v41 = vmax.f32 %v1381_v33, 0.0  ;;  %v1398_v22 = vmax.f32 %v1382_v50, 0.0  ;;  %v1399_v17 = vmax.f32 %v1383_v29, 0.0  ;;  %v1400_v25 = vmax.f32 %v1384_v20, 0.0 }
 0x4ec   :  { %v1409_v19 = vpack.c.bf16 %v1394_v10, %v1393_v24  ;;  %v2913_v53 = vpack.c.bf16 %v1396_v14, %v1395_v9  ;;  %v1385_v35 = vadd.f32 %v1375_v58, %v1363_v4  ;;  %v1386_v55 = vadd.f32 %v1375_v58, %v1364_v6  ;;  %v3094_v6 = vld [vmem:[#allocation14_spill] sm:$0xff] }
 0x4ed   :  { %v1411_v2 = vpack.c.bf16 %v1398_v22, %v1397_v41  ;;  %v1365_v23 = vmul.f32 %v1353_v37, %v2802_v51  ;;  %v1366_v16 = vmul.f32 %v1353_v37, %v2807_v48  ;;  %v2921_v11 = vpack.c.bf16 %v1400_v25, %v1399_v17  ;;  %v3095_v25 = vld [vmem:[#allocation13_spill] sm:$0xff] }
 0x4ee   :  { %2168 = vmatprep.subr.bf16.mxu1 %v1409_v19  ;;  %1707 = vmatprep.mubr.bf16.mxu0 %v1409_v19  ;;  %v1401_v21 = vmax.f32 %v1385_v35, 0.0  ;;  %v1402_v12 = vmax.f32 %v1386_v55, 0.0  ;;  %v1368_v28 = vmul.f32 %v1353_v37, %v2815_v31  ;;  %v1389_v40 = vadd.f32 %v1375_v58, %v1367_v46  ;;  %v3096_v35 = vld [vmem:[#allocation15_spill] sm:$0xff]  ;;  %v3098_v46 = vld [vmem:[#allocation18_spill] sm:$0xff] }
 0x4ef   :  { %2169 = vmatpush3.bf16.msra.mxu1 %v1409_v19  ;;  %v1387_v5 = vadd.f32 %v1375_v58, %v1365_v23  ;;  %v1388_v1 = vadd.f32 %v1375_v58, %v1366_v16  ;;  %v1370_v48 = vmul.f32 %v1353_v37, %v2823_v49  ;;  %v1369_v24 = vmul.f32 %v1353_v37, %v2819_v56  ;;  %v3091_v37 = vld [vmem:[#allocation9_spill] sm:$0xff] }
 0x4f0   :  { %2170 = vmatprep.subr.bf16.mxu1 %v2913_v53  ;;  %v2926_v13 = vpack.c.bf16 %v1402_v12, %v1401_v21  ;;  %v1390_v50 = vadd.f32 %v1375_v58, %v1368_v28  ;;  %v1405_v9 = vmax.f32 %v1389_v40, 0.0 }
 0x4f1   :  { %v1403_v33 = vmax.f32 %v1387_v5, 0.0  ;;  %v1404_v51 = vmax.f32 %v1388_v1, 0.0  ;;  %v1392_v10 = vadd.f32 %v1375_v58, %v1370_v48  ;;  %v1391_v31 = vadd.f32 %v1375_v58, %v1369_v24  ;;  %v3092_v58 = vld [vmem:[#allocation11_spill] sm:$0xff]  ;;  %v3097_v1 = vld [vmem:[#allocation16_spill] sm:$0xff] }
 0x4f2   :  { %v1406_v14 = vmax.f32 %v1390_v50, 0.0  ;;  %v3100_v50 = vld [vmem:[#allocation19_spill] sm:$0xff] }
 0x4f3   :  { %2171 = vmatpush3.bf16.msra.mxu1 %v2913_v53  ;;  %v2932_v15 = vpack.c.bf16 %v1404_v51, %v1403_v33  ;;  %v1407_v39 = vmax.f32 %v1391_v31, 0.0  ;;  %v1408_v49 = vmax.f32 %v1392_v10, 0.0  ;;  %v3099_v33 = vld [vmem:[#allocation17_spill] sm:$0xff] }
 0x4f4   :  { %2172 = vmatprep.subr.bf16.mxu1 %v1411_v2  ;;  %v2936_v3 = vpack.c.bf16 %v1406_v14, %v1405_v9  ;;  %v2989_v9 = vld [vmem:[%s3058_s3 + $0x2] ss:$0 sm:$0xff] }
 0x4f5   :  { %v2940_v19 = vpack.c.bf16 %v1408_v49, %v1407_v39 }
 0x4f7   :  { %2173 = vmatpush3.bf16.msra.mxu1 %v1411_v2 }
 0x4f8   :  { %2174 = vmatprep.subr.bf16.mxu1 %v2921_v11 }
 0x4fb   :  { %2175 = vmatpush3.bf16.msra.mxu1 %v2921_v11 }
 0x4fc   :  { %2176 = vmatprep.subr.bf16.mxu1 %v2926_v13 }
 0x4ff   :  { %2177 = vmatpush3.bf16.msra.mxu1 %v2926_v13 }
 0x500   :  { %2178 = vmatprep.subr.bf16.mxu1 %v2932_v15 }
 0x503   :  { %2179 = vmatpush3.bf16.msra.mxu1 %v2932_v15 }
 0x504   :  { %2180 = vmatprep.subr.bf16.mxu1 %v2936_v3 }
 0x507   :  { %2181 = vmatpush3.bf16.msra.mxu1 %v2936_v3 }
 0x508   :  { %2182 = vmatprep.subr.bf16.mxu1 %v2940_v19 }
 0x50b   :  { %2183 = vmatpush3.bf16.msra.mxu1 %v2940_v19 }
 0x50c   :  { %2200 = vmatprep.subr.bf16.mxu1 %v2838_v38 }
 0x50e   :  { %2185 = vmatmul.mubr.bf16.vlgmr.msra.gmra.mrb[32].mxu1 %v2479_v54  ;;  %v2271_v54 = vld [vmem:[#allocation3 + $0x170] sm:$0xff]  }
 0x50f   :  { %2188 = vmatprep.mubr.bf16.mxu1 %v2483_v57  ;;  %2208 = vmatpush3.bf16.msra.mxu1 %v2840_v18  ;;  %v2272_v57 = vld [vmem:[#allocation3 + $0x130] sm:$0xff]  }
 0x510   :  { %2201 = vmatprep.subr.bf16.mxu1 %v2842_v45  ;;  %2052 = vmatprep.subr.bf16.mxu0 %v2271_v54 }
 0x511   :  { %2053 = vmatpush3.bf16.msra.mxu0 %v2272_v57 }
 0x513   :  { %2209 = vmatpush3.bf16.msra.mxu1 %v2848_v27 }
 0x514   :  { %2202 = vmatprep.subr.bf16.mxu1 %v2855_v7 }
 0x516   :  { %2189 = vmatmul.mubr.bf16.gmra.mrb[36].mxu1 %v2488_v59  ;;  %v2273_v59 = vld [vmem:[#allocation3 + $0x178] sm:$0xff]  }
 0x517   :  { %2192 = vmatprep.mubr.bf16.mxu1 %v2491_v60  ;;  %2210 = vmatpush3.bf16.msra.mxu1 %v2862_v26  ;;  %v2274_v60 = vld [vmem:[#allocation3 + $0x138] sm:$0xff]  }
 0x518   :  { %2203 = vmatprep.subr.bf16.mxu1 %v2867_v47  ;;  %2054 = vmatprep.subr.bf16.mxu0 %v2273_v59 }
 0x519   :  { %2055 = vmatpush3.bf16.msra.mxu0 %v2274_v60 }
 0x51b   :  { %2211 = vmatpush3.bf16.msra.mxu1 %v2872_v34 }
 0x51c   :  { %2204 = vmatprep.subr.bf16.mxu1 %v2877_v0 }
 0x51e   :  { %2193 = vmatmul.mubr.bf16.gmra.mrb[40].mxu1 %v2496_v61 }
 0x51f   :  { %2196 = vmatprep.mubr.bf16.mxu1 %v2499_v62  ;;  %2212 = vmatpush3.bf16.msra.mxu1 %v2882_v44 }
 0x520   :  { %2205 = vmatprep.subr.bf16.mxu1 %v2887_v8  ;;  %v3090_v8 = vld [vmem:[#allocation10_spill] sm:$0xff] }
 0x523   :  { %2213 = vmatpush3.bf16.msra.mxu1 %v2892_v42 }
 0x524   :  { %2206 = vmatprep.subr.bf16.mxu1 %v2271_v54 }
 0x526   :  { %2197 = vmatmul.mubr.bf16.gmra.mrb[44].mxu1 %v2504_v63 }
 0x527   :  { %1723 = vmatprep.mubr.bf16.mxu1 %v1411_v2  ;;  %2214 = vmatpush3.bf16.msra.mxu1 %v2272_v57 }
 0x528   :  { %2207 = vmatprep.subr.bf16.mxu1 %v2273_v59 }
 0x52b   :  { %2215 = vmatpush3.bf16.msra.mxu1 %v2274_v60 }
 0x5e1   :  { %v2186_v61 = vpop.f32.mrb[32].mxu1 }
 0x5e2   :  { %v1451_v62 = vpop.f32.mrb[33].mxu1  ;;  %v1516_v38 = vmul.f32 %v2508_v30, %v2186_v61 }
 0x5e3   :  { %v2187_v56 = vpop.f32.mrb[34].mxu1  ;;  %v1514_v45 = vmul.f32 %v2514_v43, %v1451_v62 }
 0x5e4   :  { %v1517_v63 = vmul.f32 %v2510_v32, %v2187_v56  ;;  %v1454_v18 = vpop.f32.mrb[35].mxu1 }
 0x5e5   :  { %v1515_v27 = vmul.f32 %v2512_v36, %v1454_v18 }
 0x5e6   :  { %v1531_v7 = vpack.c.bf16 %v1517_v63, %v1516_v38 }
 0x5e7   :  { %v1530_v26 = vpack.c.bf16 %v1515_v27, %v1514_v45 }
 0x5e9   :  { %v2190_v47 = vpop.f32.mrb[36].mxu1  ;;  %1708 = vmatmul.mubr.bf16.vlgmr.msra.gmra.mrb[64].mxu0 %v1530_v26 }
 0x5ea   :  { %v1467_v34 = vpop.f32.mrb[37].mxu1  ;;  %1715 = vmatprep.mubr.bf16.mxu0 %v2913_v53  ;;  %v1520_v44 = vmul.f32 %v2520_v52, %v2190_v47  ;;  %v3093_v53 = vld [vmem:[#allocation12_spill] sm:$0xff] }
 0x5eb   :  { %v2191_v0 = vpop.f32.mrb[38].mxu1  ;;  %v1518_v32 = vmul.f32 %v3091_v37, %v1467_v34 }
 0x5ec   :  { %v1521_v42 = vmul.f32 %v3090_v8, %v2191_v0  ;;  %v1470_v30 = vpop.f32.mrb[39].mxu1 }
 0x5ed   :  { %v1519_v29 = vmul.f32 %v3092_v58, %v1470_v30 }
 0x5ee   :  { %v1533_v43 = vpack.c.bf16 %v1521_v42, %v1520_v44 }
 0x5ef   :  { %v1532_v20 = vpack.c.bf16 %v1519_v29, %v1518_v32 }
 0x5f1   :  { %v2194_v36 = vpop.f32.mrb[40].mxu1  ;;  %1716 = vmatmul.mubr.bf16.gmra.mrb[68].mxu0 %v1531_v7  ;;  %1724 = vmatmul.mubr.bf16.vlgmr.msra.gmra.mrb[48].mxu1 %v1532_v20 }
 0x5f2   :  { %v1483_v41 = vpop.f32.mrb[41].mxu1  ;;  %1731 = vmatprep.mubr.bf16.mxu1 %v2921_v11  ;;  %v1524_v4 = vmul.f32 %v3093_v53, %v2194_v36 }
 0x5f3   :  { %v2195_v22 = vpop.f32.mrb[42].mxu1  ;;  %v1522_v2 = vmul.f32 %v3095_v25, %v1483_v41 }
 0x5f4   :  { %v1525_v52 = vmul.f32 %v3094_v6, %v2195_v22  ;;  %v1486_v17 = vpop.f32.mrb[43].mxu1 }
 0x5f5   :  { %v1523_v55 = vmul.f32 %v3096_v35, %v1486_v17 }
 0x5f6   :  { %v1535_v23 = vpack.c.bf16 %v1525_v52, %v1524_v4 }
 0x5f7   :  { %v1534_v16 = vpack.c.bf16 %v1523_v55, %v1522_v2 }
 0x5f9   :  { %v2198_v21 = vpop.f32.mrb[44].mxu1  ;;  %1732 = vmatmul.mubr.bf16.gmra.mrb[52].mxu1 %v1533_v43 }
 0x5fa   :  { %v1499_v12 = vpop.f32.mrb[45].mxu1  ;;  %1739 = vmatprep.mubr.bf16.mxu1 %v2926_v13  ;;  %v1528_v11 = vmul.f32 %v3097_v1, %v2198_v21 }
 0x5fb   :  { %v2199_v5 = vpop.f32.mrb[46].mxu1  ;;  %v1526_v51 = vmul.f32 %v3099_v33, %v1499_v12 }
 0x5fc   :  { %v1529_v28 = vmul.f32 %v3098_v46, %v2199_v5  ;;  %v1502_v40 = vpop.f32.mrb[47].mxu1 }
 0x5fd   :  { %v1527_v48 = vmul.f32 %v3100_v50, %v1502_v40 }
 0x5fe   :  { %v1537_v24 = vpack.c.bf16 %v1529_v28, %v1528_v11 }
 0x5ff   :  { %v1536_v10 = vpack.c.bf16 %v1527_v48, %v1526_v51 }
 0x601   :  { %1740 = vmatmul.mubr.bf16.gmra.mrb[56].mxu1 %v1534_v16 }
 0x602   :  { %1747 = vmatprep.mubr.bf16.mxu1 %v2932_v15 }
 0x609   :  { %1748 = vmatmul.mubr.bf16.gmra.mrb[60].mxu1 %v1535_v23 }
 0x60a   :  { %1755 = vmatprep.mubr.bf16.mxu1 %v2936_v3 }
 0x611   :  { %1756 = vmatmul.mubr.bf16.gmra.mrb[64].mxu1 %v1536_v10 }
 0x612   :  { %1763 = vmatprep.mubr.bf16.mxu1 %v2940_v19 }
 0x619   :  { %1764 = vmatmul.mubr.bf16.gmra.mrb[68].mxu1 %v1537_v24 }
 0x6bc   :  { %v2056_v13 = vpop.f32.mrb[64].mxu0 }
 0x6bd   :  { %v2057_v14 = vpop.f32.mrb[65].mxu0 }
 0x6be   :  { %v2058_v31 = vadd.f32 %v2057_v14, %v2056_v13  ;;  %v2059_v39 = vpop.f32.mrb[66].mxu0 }
 0x6bf   :  { %v2060_v49 = vpop.f32.mrb[67].mxu0 }
 0x6c0   :  { %v1710_v54 = vadd.f32 %v2058_v31, %v2989_v9  ;;  %v2061_v15 = vadd.f32 %v2060_v49, %v2059_v39 }
 0x6c2   :  { %1772 = vst [vmem:[%s3061_s6] sm:$0xff] %v1710_v54  ;;  %v1713_v3 = vadd.f32 %v2061_v15, %v2989_v9 }
 0x6c4   :  { %1773 = vst [vmem:[%s3061_s6 + $0x8] sm:$0xff] %v1713_v3  ;;  %v2062_v19 = vpop.f32.mrb[68].mxu0  ;;  %v2068_v57 = vpop.f32.mrb[48].mxu1 }
 0x6c5   :  { %v2063_v59 = vpop.f32.mrb[69].mxu0  ;;  %v2069_v60 = vpop.f32.mrb[49].mxu1 }
 0x6c6   :  { %v2064_v61 = vadd.f32 %v2063_v59, %v2062_v19  ;;  %v2070_v62 = vadd.f32 %v2069_v60, %v2068_v57  ;;  %v2065_v56 = vpop.f32.mrb[70].mxu0  ;;  %v2071_v38 = vpop.f32.mrb[50].mxu1 }
 0x6c7   :  { %v2066_v63 = vpop.f32.mrb[71].mxu0  ;;  %v2072_v18 = vpop.f32.mrb[51].mxu1 }
 0x6c8   :  { %v1718_v45 = vadd.f32 %v2064_v61, %v2989_v9  ;;  %v1726_v27 = vadd.f32 %v2070_v62, %v2989_v9  ;;  %v2067_v7 = vadd.f32 %v2066_v63, %v2065_v56  ;;  %v2073_v26 = vadd.f32 %v2072_v18, %v2071_v38 }
 0x6ca   :  { %1774 = vst [vmem:[%s3061_s6 + $0x10] sm:$0xff] %v1718_v45  ;;  %1776 = vst [vmem:[%s3061_s6 + $0x20] sm:$0xff] %v1726_v27  ;;  %v1721_v47 = vadd.f32 %v2067_v7, %v2989_v9  ;;  %v1729_v34 = vadd.f32 %v2073_v26, %v2989_v9 }
 0x6cc   :  { %1775 = vst [vmem:[%s3061_s6 + $0x18] sm:$0xff] %v1721_v47  ;;  %1777 = vst [vmem:[%s3061_s6 + $0x28] sm:$0xff] %v1729_v34  ;;  %v2074_v0 = vpop.f32.mrb[52].mxu1 }
 0x6cd   :  { %v2075_v44 = vpop.f32.mrb[53].mxu1 }
 0x6ce   :  { %v2076_v8 = vadd.f32 %v2075_v44, %v2074_v0  ;;  %v2077_v42 = vpop.f32.mrb[54].mxu1 }
 0x6cf   :  { %v2078_v30 = vpop.f32.mrb[55].mxu1 }
 0x6d0   :  { %v1734_v37 = vadd.f32 %v2076_v8, %v2989_v9  ;;  %v2079_v32 = vadd.f32 %v2078_v30, %v2077_v42 }
 0x6d2   :  { %1778 = vst [vmem:[%s3061_s6 + $0x30] sm:$0xff] %v1734_v37  ;;  %v1737_v58 = vadd.f32 %v2079_v32, %v2989_v9 }
 0x6d4   :  { %1779 = vst [vmem:[%s3061_s6 + $0x38] sm:$0xff] %v1737_v58  ;;  %v2080_v29 = vpop.f32.mrb[56].mxu1 }
 0x6d5   :  { %v2081_v43 = vpop.f32.mrb[57].mxu1 }
 0x6d6   :  { %v2082_v20 = vadd.f32 %v2081_v43, %v2080_v29  ;;  %v2083_v36 = vpop.f32.mrb[58].mxu1 }
 0x6d7   :  { %v2084_v41 = vpop.f32.mrb[59].mxu1 }
 0x6d8   :  { %v1742_v22 = vadd.f32 %v2082_v20, %v2989_v9  ;;  %v2085_v53 = vadd.f32 %v2084_v41, %v2083_v36 }
 0x6da   :  { %1780 = vst [vmem:[%s3061_s6 + $0x40] sm:$0xff] %v1742_v22  ;;  %v1745_v4 = vadd.f32 %v2085_v53, %v2989_v9 }
 0x6dc   :  { %1781 = vst [vmem:[%s3061_s6 + $0x48] sm:$0xff] %v1745_v4  ;;  %v2086_v6 = vpop.f32.mrb[60].mxu1 }
 0x6dd   :  { %v2087_v52 = vpop.f32.mrb[61].mxu1 }
 0x6de   :  { %v2088_v17 = vadd.f32 %v2087_v52, %v2086_v6  ;;  %v2089_v25 = vpop.f32.mrb[62].mxu1 }
 0x6df   :  { %v2090_v2 = vpop.f32.mrb[63].mxu1 }
 0x6e0   :  { %v1750_v35 = vadd.f32 %v2088_v17, %v2989_v9  ;;  %v2091_v55 = vadd.f32 %v2090_v2, %v2089_v25 }
 0x6e2   :  { %1782 = vst [vmem:[%s3061_s6 + $0x50] sm:$0xff] %v1750_v35  ;;  %v1753_v23 = vadd.f32 %v2091_v55, %v2989_v9 }
 0x6e4   :  { %1783 = vst [vmem:[%s3061_s6 + $0x58] sm:$0xff] %v1753_v23  ;;  %v2092_v16 = vpop.f32.mrb[64].mxu1 }
 0x6e5   :  { %v2093_v21 = vpop.f32.mrb[65].mxu1 }
 0x6e6   :  { %v2094_v12 = vadd.f32 %v2093_v21, %v2092_v16  ;;  %v2095_v5 = vpop.f32.mrb[66].mxu1 }
 0x6e7   :  { %v2096_v1 = vpop.f32.mrb[67].mxu1 }
 0x6e8   :  { %v1758_v11 = vadd.f32 %v2094_v12, %v2989_v9  ;;  %v2097_v46 = vadd.f32 %v2096_v1, %v2095_v5 }
 0x6ea   :  { %1784 = vst [vmem:[%s3061_s6 + $0x60] sm:$0xff] %v1758_v11  ;;  %v1761_v28 = vadd.f32 %v2097_v46, %v2989_v9 }
 0x6ec   :  { %1785 = vst [vmem:[%s3061_s6 + $0x68] sm:$0xff] %v1761_v28  ;;  %v2098_v40 = vpop.f32.mrb[68].mxu1 }
 0x6ed   :  { %v2099_v33 = vpop.f32.mrb[69].mxu1 }
 0x6ee   :  { %v2100_v51 = vadd.f32 %v2099_v33, %v2098_v40  ;;  %v2101_v50 = vpop.f32.mrb[70].mxu1 }
 0x6ef   :  { %v2102_v48 = vpop.f32.mrb[71].mxu1 }
 0x6f0   :  { %v1766_v24 = vadd.f32 %v2100_v51, %v2989_v9  ;;  %v2103_v10 = vadd.f32 %v2102_v48, %v2101_v50 }
 0x6f2   :  { %1786 = vst [vmem:[%s3061_s6 + $0x70] sm:$0xff] %v1766_v24  ;;  %v1769_v13 = vadd.f32 %v2103_v10, %v2989_v9 }
 0x6f4   :  { %1787 = vst [vmem:[%s3061_s6 + $0x78] sm:$0xff] %v1769_v13 }
 0x6f5   :  { %1792 = vsyncpa [#allocation4], 1 }

</bundles_post_ra>
